<compile_context>
chip_gen: v7x
topology: tpu7x:2x2x1
jax: 0.10.0
libtpu: 0.0.40
codegen_flags: <defaults>
</compile_context>

<pallas_src>
import functools

import jax
import jax.numpy as jnp
from jax.experimental import pallas as pl
from jax.experimental.pallas import tpu as pltpu

_LN_EPS = 1e-5  # PyTorch nn.LayerNorm default eps


def _round_up(x, m):
    return (x + m - 1) // m * m


def _self_gate_kernel(x_ref, w1_ref, b1_ref, w2_ref, b2_ref, gamma_ref,
                      beta_ref, o_ref):
    x = x_ref[...]                                   # (tm, D), native dtype

    # gate: sigmoid(x @ W1 + b1)  -- MXU in native dtype, f32 accumulation
    z1 = jnp.dot(x, w1_ref[...], preferred_element_type=jnp.float32) + b1_ref[...]
    g1 = jax.nn.sigmoid(z1)

    # value: x @ W2 + b2
    h = jnp.dot(x, w2_ref[...], preferred_element_type=jnp.float32) + b2_ref[...]

    # gated residual (f32)
    y = g1 * h + x.astype(jnp.float32)

    # LayerNorm over the last (lane) dim
    mean = jnp.mean(y, axis=-1, keepdims=True)
    yc = y - mean
    var = jnp.mean(yc * yc, axis=-1, keepdims=True)
    inv = jax.lax.rsqrt(var + _LN_EPS)
    o_ref[...] = (yc * inv * gamma_ref[...] + beta_ref[...]).astype(o_ref.dtype)


@functools.partial(jax.jit, static_argnames=("tm",))
def self_gate(x, w1t, b1, w2t, b2, gamma, beta, *, tm=None):
    """SelfGate forward.

    x:        (..., d_model)
    w1t, w2t: (d_model, d_model) Linear weights already transposed to
              (in, out) layout (i.e. torch_linear.weight.T) -- transpose once
              at parameter-load time, not per call.
    b1, b2, gamma, beta: (d_model,)
    """
    orig_shape = x.shape
    d = orig_shape[-1]
    xf = x.reshape(-1, d)
    m = xf.shape[0]

    # Row tile: MXU-aligned 256 rows for real problems; for tiny problems use
    # the whole (8-rounded) row count.  Grid steps enable software pipelining
    # and v7x dual-TensorCore sharding via the "parallel" axis.
    if tm is None:
        tm = 256 if m >= 256 else _round_up(m, 8)
    tm = min(tm, _round_up(m, 8))
    m_pad = _round_up(m, tm)
    if m_pad != m:
        xf = jnp.pad(xf, ((0, m_pad - m), (0, 0)))

    # Matmul operands in the input dtype (no f32 upcast); small params in f32.
    w1t = w1t.astype(x.dtype)
    w2t = w2t.astype(x.dtype)
    b1r = b1.reshape(1, d).astype(jnp.float32)
    b2r = b2.reshape(1, d).astype(jnp.float32)
    gr = gamma.reshape(1, d).astype(jnp.float32)
    br = beta.reshape(1, d).astype(jnp.float32)

    grid = (m_pad // tm,)
    row_spec = pl.BlockSpec((tm, d), lambda i: (i, 0))
    w_spec = pl.BlockSpec((d, d), lambda i: (0, 0))   # weight-resident across row tiles
    v_spec = pl.BlockSpec((1, d), lambda i: (0, 0))

    itemsize = xf.dtype.itemsize
    cost = pl.CostEstimate(
        flops=4 * m_pad * d * d + 8 * m_pad * d,      # two matmuls + elementwise
        transcendentals=m_pad * d,                    # sigmoid exp
        bytes_accessed=(2 * m_pad * d + 2 * d * d) * itemsize + 4 * d * 4,
    )

    out = pl.pallas_call(
        _self_gate_kernel,
        out_shape=jax.ShapeDtypeStruct((m_pad, d), x.dtype),
        grid_spec=pltpu.PrefetchScalarGridSpec(
            num_scalar_prefetch=0,
            grid=grid,
            in_specs=[row_spec, w_spec, v_spec, w_spec, v_spec, v_spec, v_spec],
            out_specs=row_spec,
        ),
        compiler_params=pltpu.CompilerParams(
            dimension_semantics=("parallel",),
            vmem_limit_bytes=56 * 1024 * 1024,        # headroom; <= v7x physical
        ),
        cost_estimate=cost,
    )(xf, w1t, b1r, w2t, b2r, gr, br)

    return out[:m].reshape(orig_shape)


def _reference(x, w1t, b1, w2t, b2, gamma, beta):
    g1 = jax.nn.sigmoid(x @ w1t + b1)
    h = x @ w2t + b2
    y = g1 * h + x
    mean = jnp.mean(y, axis=-1, keepdims=True)
    var = jnp.mean((y - mean) ** 2, axis=-1, keepdims=True)
    return (y - mean) * jax.lax.rsqrt(var + _LN_EPS) * gamma + beta


if __name__ == "__main__":
    # The module hard-codes nn.LayerNorm(512) => d_model must be 512.
    # Keep batch/seq small.
    batch, seq, d_model = 2, 8, 512
    key = jax.random.PRNGKey(0)
    k_x, k_w1, k_b1, k_w2, k_b2, k_g, k_bt = jax.random.split(key, 7)

    x = jax.random.normal(k_x, (batch, seq, d_model), dtype=jnp.float32)

    # nn.Linear-style uniform(-1/sqrt(d), 1/sqrt(d)) init.
    bound = 1.0 / (d_model ** 0.5)
    w1 = jax.random.uniform(k_w1, (d_model, d_model), minval=-bound, maxval=bound,
                            dtype=jnp.float32)
    b1 = jax.random.uniform(k_b1, (d_model,), minval=-bound, maxval=bound,
                            dtype=jnp.float32)
    w2 = jax.random.uniform(k_w2, (d_model, d_model), minval=-bound, maxval=bound,
                            dtype=jnp.float32)
    b2 = jax.random.uniform(k_b2, (d_model,), minval=-bound, maxval=bound,
                            dtype=jnp.float32)
    # PyTorch LN default init is ones/zeros; perturb so the affine path is tested.
    gamma = 1.0 + 0.1 * jax.random.normal(k_g, (d_model,), dtype=jnp.float32)
    beta = 0.1 * jax.random.normal(k_bt, (d_model,), dtype=jnp.float32)

    # Pre-transpose PyTorch (out, in) weights ONCE, outside the hot path.
    w1t = jnp.transpose(w1)
    w2t = jnp.transpose(w2)

    # tm=8 so even this tiny problem exercises a multi-step (pipelined) grid.
    out = self_gate(x, w1t, b1, w2t, b2, gamma, beta, tm=8)
    jax.block_until_ready(out)

    ref = _reference(x, w1t, b1, w2t, b2, gamma, beta)
    # Tolerance accounts for MXU bf16-pass matmul rounding vs XLA's dot algorithm.
    assert jnp.allclose(out, ref, atol=5e-3, rtol=5e-3), "SelfGate mismatch"

    print("KERNEL_OK")
</pallas_src>

<mosaic_0001>
module attributes {stable_mosaic.version = 11 : i64} {
  func.func @_self_gate_kernel(%arg0: i32, %arg1: memref<8x512xf32, #tpu.memory_space<vmem>>, %arg2: memref<512x512xf32, #tpu.memory_space<vmem>>, %arg3: memref<1x512xf32, #tpu.memory_space<vmem>>, %arg4: memref<512x512xf32, #tpu.memory_space<vmem>>, %arg5: memref<1x512xf32, #tpu.memory_space<vmem>>, %arg6: memref<1x512xf32, #tpu.memory_space<vmem>>, %arg7: memref<1x512xf32, #tpu.memory_space<vmem>>, %arg8: memref<8x512xf32, #tpu.memory_space<vmem>>) attributes {dimension_semantics = [#tpu.dimension_semantics<parallel>], iteration_bounds = array<i64: 2>, scalar_prefetch = 0 : i64, scratch_operands = 0 : i64, tpu.core_type = #tpu.core_type<tc>, window_params = [{transform_indices = @transform_0, window_bounds = array<i64: 8, 512>}, {pipeline_mode = #tpu.pipeline_mode<synchronous>, transform_indices = @transform_1, window_bounds = array<i64: 512, 512>}, {pipeline_mode = #tpu.pipeline_mode<synchronous>, transform_indices = @transform_2, window_bounds = array<i64: 1, 512>}, {pipeline_mode = #tpu.pipeline_mode<synchronous>, transform_indices = @transform_3, window_bounds = array<i64: 512, 512>}, {pipeline_mode = #tpu.pipeline_mode<synchronous>, transform_indices = @transform_4, window_bounds = array<i64: 1, 512>}, {pipeline_mode = #tpu.pipeline_mode<synchronous>, transform_indices = @transform_5, window_bounds = array<i64: 1, 512>}, {pipeline_mode = #tpu.pipeline_mode<synchronous>, transform_indices = @transform_6, window_bounds = array<i64: 1, 512>}, {transform_indices = @transform_7, window_bounds = array<i64: 8, 512>}]} {
    %c0 = arith.constant 0 : index
    %c0_0 = arith.constant 0 : index
    %0 = vector.load %arg1[%c0, %c0_0] : memref<8x512xf32, #tpu.memory_space<vmem>>, vector<8x512xf32>
    %c0_1 = arith.constant 0 : index
    %c0_2 = arith.constant 0 : index
    %1 = vector.load %arg2[%c0_1, %c0_2] : memref<512x512xf32, #tpu.memory_space<vmem>>, vector<512x512xf32>
    %cst = arith.constant dense<0.000000e+00> : vector<8x512xf32>
    %2 = tpu.matmul %0, %1, %cst {dimension_numbers = #tpu.dot_dimension_numbers<[1], [0], [0], [1], [0, 0, 1, 1], [], []>} : vector<8x512xf32>, vector<512x512xf32>, vector<8x512xf32> -> vector<8x512xf32>
    %c0_3 = arith.constant 0 : index
    %c0_4 = arith.constant 0 : index
    %3 = vector.load %arg3[%c0_3, %c0_4] : memref<1x512xf32, #tpu.memory_space<vmem>>, vector<1x512xf32>
    %4 = vector.broadcast %3 : vector<1x512xf32> to vector<8x512xf32>
    %5 = arith.addf %2, %4 : vector<8x512xf32>
    %6 = arith.negf %5 : vector<8x512xf32>
    %7 = math.exp %6 : vector<8x512xf32>
    %cst_5 = arith.constant 1.000000e+00 : f32
    %8 = vector.broadcast %cst_5 : f32 to vector<8x512xf32>
    %9 = arith.addf %8, %7 : vector<8x512xf32>
    %10 = arith.divf %8, %9 : vector<8x512xf32>
    %c0_6 = arith.constant 0 : index
    %c0_7 = arith.constant 0 : index
    %11 = vector.load %arg4[%c0_6, %c0_7] : memref<512x512xf32, #tpu.memory_space<vmem>>, vector<512x512xf32>
    %cst_8 = arith.constant dense<0.000000e+00> : vector<8x512xf32>
    %12 = tpu.matmul %0, %11, %cst_8 {dimension_numbers = #tpu.dot_dimension_numbers<[1], [0], [0], [1], [0, 0, 1, 1], [], []>} : vector<8x512xf32>, vector<512x512xf32>, vector<8x512xf32> -> vector<8x512xf32>
    %c0_9 = arith.constant 0 : index
    %c0_10 = arith.constant 0 : index
    %13 = vector.load %arg5[%c0_9, %c0_10] : memref<1x512xf32, #tpu.memory_space<vmem>>, vector<1x512xf32>
    %14 = vector.broadcast %13 : vector<1x512xf32> to vector<8x512xf32>
    %15 = arith.addf %12, %14 : vector<8x512xf32>
    %16 = arith.mulf %10, %15 : vector<8x512xf32>
    %17 = arith.addf %16, %0 : vector<8x512xf32>
    %cst_11 = arith.constant dense<0.000000e+00> : vector<8xf32>
    %18 = vector.multi_reduction <add>, %17, %cst_11 [1] : vector<8x512xf32> to vector<8xf32>
    %19 = vector.shape_cast %18 : vector<8xf32> to vector<8x1xf32>
    %cst_12 = arith.constant 5.120000e+02 : f32
    %20 = vector.broadcast %cst_12 : f32 to vector<8x1xf32>
    %21 = arith.divf %19, %20 : vector<8x1xf32>
    %22 = vector.broadcast %21 : vector<8x1xf32> to vector<8x512xf32>
    %23 = arith.subf %17, %22 : vector<8x512xf32>
    %24 = arith.mulf %23, %23 : vector<8x512xf32>
    %cst_13 = arith.constant dense<0.000000e+00> : vector<8xf32>
    %25 = vector.multi_reduction <add>, %24, %cst_13 [1] : vector<8x512xf32> to vector<8xf32>
    %26 = vector.shape_cast %25 : vector<8xf32> to vector<8x1xf32>
    %cst_14 = arith.constant 5.120000e+02 : f32
    %27 = vector.broadcast %cst_14 : f32 to vector<8x1xf32>
    %28 = arith.divf %26, %27 : vector<8x1xf32>
    %cst_15 = arith.constant 9.99999974E-6 : f32
    %29 = vector.broadcast %cst_15 : f32 to vector<8x1xf32>
    %30 = arith.addf %28, %29 : vector<8x1xf32>
    %31 = math.rsqrt %30 : vector<8x1xf32>
    %32 = vector.broadcast %31 : vector<8x1xf32> to vector<8x512xf32>
    %33 = arith.mulf %23, %32 : vector<8x512xf32>
    %c0_16 = arith.constant 0 : index
    %c0_17 = arith.constant 0 : index
    %34 = vector.load %arg6[%c0_16, %c0_17] : memref<1x512xf32, #tpu.memory_space<vmem>>, vector<1x512xf32>
    %35 = vector.broadcast %34 : vector<1x512xf32> to vector<8x512xf32>
    %36 = arith.mulf %33, %35 : vector<8x512xf32>
    %c0_18 = arith.constant 0 : index
    %c0_19 = arith.constant 0 : index
    %37 = vector.load %arg7[%c0_18, %c0_19] : memref<1x512xf32, #tpu.memory_space<vmem>>, vector<1x512xf32>
    %38 = vector.broadcast %37 : vector<1x512xf32> to vector<8x512xf32>
    %39 = arith.addf %36, %38 : vector<8x512xf32>
    %c0_20 = arith.constant 0 : index
    %c0_21 = arith.constant 0 : index
    %40 = vector.load %arg8[%c0_20, %c0_21] : memref<8x512xf32, #tpu.memory_space<vmem>>, vector<8x512xf32>
    tpu.vector_store %arg8[%c0_20, %c0_21], %39 {strides = array<i32>} : memref<8x512xf32, #tpu.memory_space<vmem>>, vector<8x512xf32>,
    return
  }
  func.func @transform_0(%arg0: i32) -> (i32, i32) {
    %c0_i32 = arith.constant 0 : i32
    %c0_i32_0 = arith.constant 0 : i32
    return %arg0, %c0_i32 : i32, i32
  }
  func.func @transform_1(%arg0: i32) -> (i32, i32) {
    %c0_i32 = arith.constant 0 : i32
    %c0_i32_0 = arith.constant 0 : i32
    %c0_i32_1 = arith.constant 0 : i32
    return %c0_i32, %c0_i32_0 : i32, i32
  }
  func.func @transform_2(%arg0: i32) -> (i32, i32) {
    %c0_i32 = arith.constant 0 : i32
    %c0_i32_0 = arith.constant 0 : i32
    %c0_i32_1 = arith.constant 0 : i32
    return %c0_i32, %c0_i32_0 : i32, i32
  }
  func.func @transform_3(%arg0: i32) -> (i32, i32) {
    %c0_i32 = arith.constant 0 : i32
    %c0_i32_0 = arith.constant 0 : i32
    %c0_i32_1 = arith.constant 0 : i32
    return %c0_i32, %c0_i32_0 : i32, i32
  }
  func.func @transform_4(%arg0: i32) -> (i32, i32) {
    %c0_i32 = arith.constant 0 : i32
    %c0_i32_0 = arith.constant 0 : i32
    %c0_i32_1 = arith.constant 0 : i32
    return %c0_i32, %c0_i32_0 : i32, i32
  }
  func.func @transform_5(%arg0: i32) -> (i32, i32) {
    %c0_i32 = arith.constant 0 : i32
    %c0_i32_0 = arith.constant 0 : i32
    %c0_i32_1 = arith.constant 0 : i32
    return %c0_i32, %c0_i32_0 : i32, i32
  }
  func.func @transform_6(%arg0: i32) -> (i32, i32) {
    %c0_i32 = arith.constant 0 : i32
    %c0_i32_0 = arith.constant 0 : i32
    %c0_i32_1 = arith.constant 0 : i32
    return %c0_i32, %c0_i32_0 : i32, i32
  }
  func.func @transform_7(%arg0: i32) -> (i32, i32) {
    %c0_i32 = arith.constant 0 : i32
    %c0_i32_0 = arith.constant 0 : i32
    return %arg0, %c0_i32 : i32, i32
  }
}

</mosaic_0001>

<bundles_post_ra>
// kernel: self_gate.1
= control target key start
LH: loop header
LB: loop body
LE: loop exit
PB: predicated region body
PF: predicated region fallthrough
CT: control target
= control target key end

     0   :  { %12 = vsyncpa [#allocation3], 0  ;;  %s2820_s0 = inlined_call_operand.hbm [shape: f32[16,512], index: 0, kind: input, shape index: {}]   ;;  %s2821_s1 = inlined_call_operand.hbm [shape: f32[512,512], index: 1, kind: input, shape index: {}]   ;;  %s2822_s2 = inlined_call_operand.vmem [shape: f32[1,512], index: 2, kind: input, shape index: {}]   ;;  %s2823_s3 = inlined_call_operand.hbm [shape: f32[512,512], index: 3, kind: input, shape index: {}]   ;;  %s2824_s4 = inlined_call_operand.vmem [shape: f32[1,512], index: 4, kind: input, shape index: {}]   ;;  %s2825_s5 = inlined_call_operand.vmem [shape: f32[1,512], index: 5, kind: input, shape index: {}]   ;;  %s2826_s6 = inlined_call_operand.vmem [shape: f32[1,512], index: 6, kind: input, shape index: {}]   ;;  %s2827_s7 = inlined_call_operand.hbm [shape: f32[16,512], index: 7, kind: output, shape index: {}]  }
   0x1   :  { %14 = vsyncpa [#allocation3 + $0x1], 0 }
   0x2   :  { %15 = vsyncpa [#allocation6], 0 }
   0x3   :  { %16 = vsyncpa [#allocation4], 0 }
   0x4   :  { %18 = vsyncpa [#allocation4 + $0x1], 0  ;;  %s2518_s24 = smov 0   ;;  %s2520_s25 = smov 0  }
   0x5   :  { %s2522_s26 = smov 0   ;;  %s2524_s27 = smov 0  }
   0x6 LB: > { %s2539_s28 = sadd.s32 4294967295, %s2470_s27   ;;  %s1671_s29 = sadd.s32 4294967294, %s2470_s27   ;;  %s2470_s27 = sphi %s2524_s27, %s2847_s27   ;;  %s2466_s26 = sphi %s2522_s26, %s2846_s26   ;;  %s2462_s25 = sphi %s2520_s25, %s2845_s25   ;;  %s2458_s24 = sphi %s2518_s24, %s2844_s24  }
   0x7   : > { %p44_p0 = scmp.ne.s32.totalorder %s2462_s25, %s2458_s24  ;;  %p2828_p1 = scmp.eq.s32.totalorder %s2539_s28, 0 }
   0x8   : > { %p200_p3 = scmp.eq.s32.totalorder %s1671_s29, 1  ;;  %p1672_p5 = scmp.ge.s32.totalorder %s2470_s27, 1 }
   0x9   : > { %p2548_p4 = por %p2828_p1, %p44_p0  ;;  %p207_p7 = scmp.lt.s32.totalorder %s2470_s27, 3 }
   0xa   : > { %p2553_p6 = por %p200_p3, %p44_p0  ;;  %s2472_s10 = smov [#allocation5]  }
   0xb   : > { %s2831_s30 = scalar_select %p2548_p4, 1, 0 }
   0xc   : > { %s2832_s8 = scalar_select %p2553_p6, 1, 0 }
   0xd   : > { %p2558_p8 = pnand %p1672_p5, %p207_p7  ;;  %s219_s11 = sshll.u32 %s2472_s10, 4  ;;  %s2562_s11 = int_to_ptr.vmem [resolvable:$true] %s219_s11 }
   0xe   : > { %s2473_s13 = smov [#allocation7]   ;;  %s2314_s17 = scalar_lea.hbm %s2821_s1, 32768 }
   0xf   : > { %p2235_p9 = pneg %p2558_p8  ;;  %s235_s14 = sshll.u32 %s2473_s13, 4  ;;  %s2573_s14 = int_to_ptr.vmem [resolvable:$true] %s235_s14 }
  0x10   : > { %p2315_p12 = scmp.ne.s32.totalorder %s2821_s1, %s2314_s17  ;;  %p2321_p5 = scmp.lt.u32.totalorder %s2314_s17, %s2821_s1 }
  0x11   : > { %p2569_p11 = pnand %p2235_p9, %p2828_p1 }
  0x13   : > { %p2316_p13 = pneg %p2569_p11 }
  0x15   : > { %p2317_p0 = pnand %p2316_p13, %p2315_p12 }
  0x17   : > { %p2318_p3 = pneg %p2317_p0 }
  0x19   : > { %p2323_p7 = pnand %p2321_p5, %p2318_p3 }
  0x1b   : > { %2326 = shalt.err (!%p2323_p7)
}
  0x1c   : > { %s2327_s22 = scalar_lea.vmem %s2562_s11, 32768  ;;  %p2335_p2 = scmp.lt.s32.totalorder %s2562_s11, %s2562_s11 }
  0x1d   : > { %p2328_p9 = scmp.ne.s32.totalorder %s2562_s11, %s2327_s22  ;;  %p2336_p12 = scmp.lt.s32.totalorder %s2327_s22, %s2327_s22 }
  0x1f   : > { %p2330_p10 = pnand %p2328_p9, %p2316_p13  ;;  %p2337_p0 = por %p2336_p12, %p2335_p2 }
  0x21   : > { %p2331_p1 = pneg %p2330_p10 }
  0x23   : > { %p2338_p6 = pnand %p2337_p0, %p2331_p1 }
  0x25   : > { %2341 = shalt.err (!%p2338_p6)
}
  0x26   : > { %s2474_s23 = smov 512   ;;  %s2475_s29 = smov 32  }
  0x27   : > { %2238 = dma.hbm_to_vmem [thread:$0]  (!%p2569_p11), %s2821_s1, 32768, %s2562_s11, [#allocation6], %s2474_s23, %s2474_s23, %s2475_s29  }
  0x28   : > { %s2342_s17 = scalar_lea.hbm %s2823_s3, 32768 }
  0x29   : > { %p2343_p2 = scmp.ne.s32.totalorder %s2823_s3, %s2342_s17  ;;  %p2349_p10 = scmp.lt.u32.totalorder %s2342_s17, %s2823_s3 }
  0x2b   : > { %p2345_p1 = pnand %p2343_p2, %p2316_p13 }
  0x2d   : > { %p2346_p6 = pneg %p2345_p1 }
  0x2f   : > { %p2351_p3 = pnand %p2349_p10, %p2346_p6 }
  0x31   : > { %2354 = shalt.err (!%p2351_p3)
}
  0x32   : > { %s2355_s11 = scalar_lea.vmem %s2573_s14, 32768  ;;  %p2363_p12 = scmp.lt.s32.totalorder %s2573_s14, %s2573_s14 }
  0x33   : > { %p2356_p5 = scmp.ne.s32.totalorder %s2573_s14, %s2355_s11  ;;  %p2364_p0 = scmp.lt.s32.totalorder %s2355_s11, %s2355_s11 }
  0x35   : > { %p2358_p7 = pnand %p2356_p5, %p2316_p13  ;;  %p2365_p2 = por %p2364_p0, %p2363_p12 }
  0x37   : > { %p2359_p9 = pneg %p2358_p7 }
  0x39   : > { %p2366_p1 = pnand %p2365_p2, %p2359_p9 }
  0x3b   : > { %2369 = shalt.err (!%p2366_p1)
}
  0x3c   : > { %2241 = dma.hbm_to_vmem [thread:$0]  (!%p2569_p11), %s2823_s3, 32768, %s2573_s14, [#allocation6], %s2474_s23, %s2474_s23, %s2475_s29  }
  0x3d   : > { %s2628_s13 = sadd.s32 1, %s2470_s27   ;;  %s31_s12 = sadd.s32 1, %s2466_s26 }
  0x3e   : > { %s28_s15 = ssub.s32 %s2470_s27, %s2628_s13  ;;  %p38_p13 = scmp.ne.s32.totalorder %s2466_s26, %s2462_s25 }
  0x3f   : > { %p29_p6 = scmp.eq.s32.totalorder %s28_s15, 0  ;;  %p39_p10 = scmp.eq.s32.totalorder %s2470_s27, 0 }
  0x40   : > { %p2835_p3 = scmp.eq.s32.totalorder %s2539_s28, 1  ;;  %p2252_p7 = scmp.lt.s32.totalorder %s2470_s27, 2 }
  0x41   : > { %s2644_s17 = scalar_select %p29_p6, %s2466_s26, %s31_s12  }
  0x42   : > { %p2638_p5 = por %p2835_p3, %p38_p13  ;;  %p40_p9 = por %p39_p10, %p38_p13 }
  0x43   : > { %s258_s18 = sand.u32 1, %s2466_s26   ;;  %s1693_s14 = sshll.u32 %s2470_s27, 9 }
  0x44   : > { %s2836_s16 = scalar_select %p2638_p5, 1, 0 }
  0x45   : > { %s1676_s19 = sshll.u32 %s258_s18, 5  ;;  %s2651_s20 = scalar_lea.hbm %s2820_s0, %s1693_s14 }
  0x46   : > { %s262_s21 = scalar_lea.vmem [#allocation2], %s1676_s19  ;;  %p2655_p11 = pnand %p2252_p7, %p40_p9 }
  0x47   : > { %s270_s11 = sshll.u32 %s262_s21, 4  ;;  %s259_s10 = scalar_lea.sflag [#allocation3], %s258_s18  ;;  %s2653_s11 = int_to_ptr.vmem [resolvable:$true] %s270_s11 }
  0x48   : > { %s2370_s12 = scalar_lea.hbm %s2651_s20, 512  ;;  %p2372_p0 = pneg %p2655_p11 }
  0x49   : > { %p2371_p12 = scmp.ne.s32.totalorder %s2651_s20, %s2370_s12  ;;  %s2375_s14 = scalar_lea.hbm %s2820_s0, 1024 }
  0x4a   : > { %p2376_p13 = scmp.lt.u32.totalorder %s2651_s20, %s2820_s0  ;;  %p2377_p6 = scmp.lt.u32.totalorder %s2375_s14, %s2370_s12 }
  0x4b   : > { %p2373_p2 = pnand %p2372_p0, %p2371_p12  ;;  %p2379_p3 = scmp.lt.u32.totalorder %s2370_s12, %s2651_s20 }
  0x4c   : > { %p2378_p10 = por %p2377_p6, %p2376_p13 }
  0x4d   : > { %p2374_p1 = pneg %p2373_p2 }
  0x4e   : > { %p2380_p7 = por %p2379_p3, %p2378_p10 }
  0x50   : > { %p2381_p9 = pnand %p2380_p7, %p2374_p1 }
  0x52   : > { %2384 = shalt.err (!%p2381_p9)
}
  0x53   : > { %s2385_s18 = scalar_lea.vmem %s2653_s11, 512  ;;  %s2476_s21 = smov [#allocation2]  }
  0x54   : > { %p2386_p12 = scmp.ne.s32.totalorder %s2653_s11, %s2385_s18  ;;  %s2390_s15 = sshll.u32 %s2476_s21, 4  ;;  %s2391_s15 = int_to_ptr.vmem [resolvable:$false] %s2390_s15 }
  0x55   : > { %s2392_s19 = scalar_lea.vmem %s2391_s15, 1024  ;;  %p2393_p4 = scmp.lt.s32.totalorder %s2653_s11, %s2391_s15 }
  0x56   : > { %p2388_p2 = pnand %p2386_p12, %p2372_p0  ;;  %p2394_p13 = scmp.lt.s32.totalorder %s2392_s19, %s2385_s18 }
  0x58   : > { %p2389_p5 = pneg %p2388_p2  ;;  %p2395_p6 = por %p2394_p13, %p2393_p4 }
  0x5a   : > { %p2396_p10 = pnand %p2395_p6, %p2389_p5 }
  0x5c   : > { %2399 = shalt.err (!%p2396_p10)
}
  0x5d   : > { %2245 = dma.hbm_to_vmem [thread:$0]  (!%p2655_p11), %s2651_s20, 512, %s2653_s11, %s259_s10  }
  0x5e   : > { %279 = sbr.rel (%p2558_p8) target bundleno = 922 (0x39a), region = 48  ;;  %s2687_s12 = sand.u32 (!%p2558_p8), 1, %s2462_s25  }
  0x5f   : > { %s1680_s14 = sshll.u32 (!%p2558_p8), %s2687_s12, 5  ;;  %s282_s23 = scalar_lea.sflag (!%p2558_p8), [#allocation3], %s2687_s12 }
  0x60   : > { %s2693_s29 = scalar_lea.vmem (!%p2558_p8), [#allocation2], %s1680_s14  ;;  %p2838_p4 = scmp.ne.s32.totalorder (!%p2558_p8), %s2831_s30, 0 }
  0x65   : > { %2445 = dma.done.wait (%p2838_p4), %s282_s23, 512  }
  0x66   : > { %2447 = vsyncadd (%p2838_p4), %s282_s23, 4294966784  ;;  %p2839_p5 = scmp.eq.s32.totalorder %s2539_s28, 0 }
  0x68   : > { %2449 = dma.done.wait (%p2839_p5), [#allocation6], 65536   ;;  %p2840_p8 = pmov %p2839_p5 }
  0x69   : > { %v329_v0 = vld [vmem:[#allocation5 + $0x8] sm:$0xff]  ;;  %v331_v2 = vld [vmem:[#allocation5 + $0x18] sm:$0xff]  ;;  %v328_v5 = vld [vmem:[#allocation5] sm:$0xff]  ;;  %s1694_s15 = sshll.u32 %s2539_s28, 9  ;;  %s323_s19 = scalar_lea.vmem [#allocation8], %s1680_s14 }
  0x6a   : > { %2451 = vsyncadd (%p2840_p8), [#allocation6], 4294901760  ;;  %v333_v1 = vld [vmem:[#allocation5 + $0x28] sm:$0xff]  ;;  %v335_v4 = vld [vmem:[#allocation5 + $0x38] sm:$0xff]  ;;  %s1582_s23 = sshll.u32 %s323_s19, 4  ;;  %s2776_s9 = scalar_lea.hbm %s2827_s7, %s1694_s15  ;;  %s2778_s23 = int_to_ptr.vmem [resolvable:$true] %s1582_s23 }
  0x6b   : > { %v1695_v3 = vpack.c.bf16 %v333_v1, %v329_v0  ;;  %v332_v6 = vld [vmem:[#allocation5 + $0x20] sm:$0xff]  ;;  %v1823_v7 = vpack.c.bf16 %v335_v4, %v331_v2  ;;  %v330_v9 = vld [vmem:[#allocation5 + $0x10] sm:$0xff]  ;;  %v337_v11 = vld [vmem:[#allocation5 + $0x48] sm:$0xff]  ;;  %s1568_s28 = scalar_lea.sflag [#allocation4], %s2687_s12  ;;  %s2400_s14 = scalar_lea.vmem %s2778_s23, 512 }
  0x6c   : > { %v1697_v8 = vpack.c.bf16 %v332_v6, %v328_v5  ;;  %v334_v10 = vld [vmem:[#allocation5 + $0x30] sm:$0xff]  ;;  %v341_v13 = vld [vmem:[#allocation5 + $0x68] sm:$0xff]  ;;  %v339_v14 = vld [vmem:[#allocation5 + $0x58] sm:$0xff]  ;;  %p2401_p11 = scmp.ne.s32.totalorder %s2778_s23, %s2400_s14  ;;  %p2841_p0 = scmp.ne.s32.totalorder %s2836_s16, 0 }
  0x6d   : > { %1696 = vmatprep.subr.bf16.mxu0 %v1695_v3  ;;  %v1825_v12 = vpack.c.bf16 %v334_v10, %v330_v9  ;;  %v343_v15 = vld [vmem:[#allocation5 + $0x78] sm:$0xff]  ;;  %1824 = vmatprep.subr.bf16.mxu1 %v1823_v7  ;;  %v1699_v16 = vpack.c.bf16 %v341_v13, %v337_v11  ;;  %v336_v18 = vld [vmem:[#allocation5 + $0x40] sm:$0xff]  ;;  %v338_v20 = vld [vmem:[#allocation5 + $0x50] sm:$0xff]  ;;  %s2477_s20 = smov [#allocation8]  }
  0x6e   : > { %1698 = vmatpush1.bf16.msra.mxu0 %v1697_v8  ;;  %v1827_v17 = vpack.c.bf16 %v343_v15, %v339_v14  ;;  %v340_v19 = vld [vmem:[#allocation5 + $0x60] sm:$0xff]  ;;  %v342_v22 = vld [vmem:[#allocation5 + $0x70] sm:$0xff]  ;;  %v345_v23 = vld [vmem:[#allocation5 + $0x88] sm:$0xff]  ;;  %p2402_p1 = pnand %p2401_p11, %p2841_p0  ;;  %s2404_s11 = sshll.u32 %s2477_s20, 4  ;;  %s2405_s11 = int_to_ptr.vmem [resolvable:$false] %s2404_s11 }
  0x6f   : > { %1826 = vmatpush1.bf16.msra.mxu1 %v1825_v12  ;;  %v1701_v21 = vpack.c.bf16 %v340_v19, %v336_v18  ;;  %v349_v24 = vld [vmem:[#allocation5 + $0xa8] sm:$0xff]  ;;  %1700 = vmatprep.subr.bf16.mxu0 %v1699_v16  ;;  %v1829_v25 = vpack.c.bf16 %v342_v22, %v338_v20  ;;  %v347_v27 = vld [vmem:[#allocation5 + $0x98] sm:$0xff]  ;;  %v344_v29 = vld [vmem:[#allocation5 + $0x80] sm:$0xff]  ;;  %s2406_s22 = scalar_lea.vmem %s2405_s11, 1024  ;;  %p2407_p7 = scmp.lt.s32.totalorder %s2778_s23, %s2405_s11 }
  0x70   : > { %1828 = vmatprep.subr.bf16.mxu1 %v1827_v17  ;;  %v1703_v26 = vpack.c.bf16 %v349_v24, %v345_v23  ;;  %v351_v28 = vld [vmem:[#allocation5 + $0xb8] sm:$0xff]  ;;  %v348_v31 = vld [vmem:[#allocation5 + $0xa0] sm:$0xff]  ;;  %v346_v32 = vld [vmem:[#allocation5 + $0x90] sm:$0xff]  ;;  %p2403_p3 = pneg %p2402_p1  ;;  %p2408_p9 = scmp.lt.s32.totalorder %s2406_s22, %s2400_s14 }
  0x71   : > { %v1831_v30 = vpack.c.bf16 %v351_v28, %v347_v27  ;;  %v350_v33 = vld [vmem:[#allocation5 + $0xb0] sm:$0xff]  ;;  %v1705_v34 = vpack.c.bf16 %v348_v31, %v344_v29  ;;  %v353_v35 = vld [vmem:[#allocation5 + $0xc8] sm:$0xff]  ;;  %v355_v37 = vld [vmem:[#allocation5 + $0xd8] sm:$0xff] }
  0x72   : > { %1702 = vmatpush1.bf16.msra.mxu0 %v1701_v21  ;;  %v357_v36 = vld [vmem:[#allocation5 + $0xe8] sm:$0xff]  ;;  %v1833_v38 = vpack.c.bf16 %v350_v33, %v346_v32  ;;  %v359_v40 = vld [vmem:[#allocation5 + $0xf8] sm:$0xff]  ;;  %v352_v41 = vld [vmem:[#allocation5 + $0xc0] sm:$0xff]  ;;  %p2409_p12 = por %p2408_p9, %p2407_p7 }
  0x73   : > { %1830 = vmatpush1.bf16.msra.mxu1 %v1829_v25  ;;  %1704 = vmatprep.subr.bf16.mxu0 %v1703_v26  ;;  %v1707_v39 = vpack.c.bf16 %v357_v36, %v353_v35  ;;  %v356_v42 = vld [vmem:[#allocation5 + $0xe0] sm:$0xff]  ;;  %v1835_v43 = vpack.c.bf16 %v359_v40, %v355_v37  ;;  %v354_v44 = vld [vmem:[#allocation5 + $0xd0] sm:$0xff]  ;;  %v361_v46 = vld [vmem:[#allocation5 + $0x108] sm:$0xff] }
  0x74   : > { %1832 = vmatprep.subr.bf16.mxu1 %v1831_v30  ;;  %v358_v45 = vld [vmem:[#allocation5 + $0xf0] sm:$0xff]  ;;  %v365_v47 = vld [vmem:[#allocation5 + $0x128] sm:$0xff]  ;;  %v363_v48 = vld [vmem:[#allocation5 + $0x118] sm:$0xff]  ;;  %v1709_v50 = vpack.c.bf16 %v356_v42, %v352_v41  ;;  %p2410_p2 = pnand %p2409_p12, %p2403_p3 }
  0x75   : > { %v367_v49 = vld [vmem:[#allocation5 + $0x138] sm:$0xff]  ;;  %v1837_v51 = vpack.c.bf16 %v358_v45, %v354_v44  ;;  %v1711_v52 = vpack.c.bf16 %v365_v47, %v361_v46  ;;  %v360_v53 = vld [vmem:[#allocation5 + $0x100] sm:$0xff]  ;;  %v362_v55 = vld [vmem:[#allocation5 + $0x110] sm:$0xff] }
  0x76   : > { %1706 = vmatpush1.bf16.msra.mxu0 %v1705_v34  ;;  %v364_v54 = vld [vmem:[#allocation5 + $0x120] sm:$0xff]  ;;  %v1839_v56 = vpack.c.bf16 %v367_v49, %v363_v48  ;;  %v366_v57 = vld [vmem:[#allocation5 + $0x130] sm:$0xff]  ;;  %v369_v58 = vld [vmem:[#allocation5 + $0x148] sm:$0xff] }
  0x77   : > { %1834 = vmatpush1.bf16.msra.mxu1 %v1833_v38  ;;  %1708 = vmatprep.subr.bf16.mxu0 %v1707_v39  ;;  %v373_v59 = vld [vmem:[#allocation5 + $0x168] sm:$0xff]  ;;  %v371_v60 = vld [vmem:[#allocation5 + $0x158] sm:$0xff]  ;;  %v1713_v62 = vpack.c.bf16 %v364_v54, %v360_v53  ;;  %v1841_v63 = vpack.c.bf16 %v366_v57, %v362_v55  ;;  %v368_v1 = vld [vmem:[#allocation5 + $0x140] sm:$0xff] }
  0x78   : > { %1836 = vmatprep.subr.bf16.mxu1 %v1835_v43  ;;  %v375_v61 = vld [vmem:[#allocation5 + $0x178] sm:$0xff]  ;;  %v1715_v0 = vpack.c.bf16 %v373_v59, %v369_v58  ;;  %v372_v2 = vld [vmem:[#allocation5 + $0x160] sm:$0xff]  ;;  %v370_v3 = vld [vmem:[#allocation5 + $0x150] sm:$0xff] }
  0x79   : > { %v1843_v4 = vpack.c.bf16 %v375_v61, %v371_v60  ;;  %v374_v5 = vld [vmem:[#allocation5 + $0x170] sm:$0xff]  ;;  %v377_v6 = vld [vmem:[#allocation5 + $0x188] sm:$0xff]  ;;  %v379_v8 = vld [vmem:[#allocation5 + $0x198] sm:$0xff]  ;;  %v1717_v10 = vpack.c.bf16 %v372_v2, %v368_v1 }
  0x7a   : > { %1710 = vmatpush1.bf16.msra.mxu0 %v1709_v50  ;;  %v381_v7 = vld [vmem:[#allocation5 + $0x1a8] sm:$0xff]  ;;  %v383_v9 = vld [vmem:[#allocation5 + $0x1b8] sm:$0xff]  ;;  %v1845_v11 = vpack.c.bf16 %v374_v5, %v370_v3  ;;  %v376_v13 = vld [vmem:[#allocation5 + $0x180] sm:$0xff] }
  0x7b   : > { %1838 = vmatpush1.bf16.msra.mxu1 %v1837_v51  ;;  %1712 = vmatprep.subr.bf16.mxu0 %v1711_v52  ;;  %v1719_v12 = vpack.c.bf16 %v381_v7, %v377_v6  ;;  %v380_v14 = vld [vmem:[#allocation5 + $0x1a0] sm:$0xff]  ;;  %v378_v15 = vld [vmem:[#allocation5 + $0x190] sm:$0xff]  ;;  %v1847_v16 = vpack.c.bf16 %v383_v9, %v379_v8  ;;  %v385_v18 = vld [vmem:[#allocation5 + $0x1c8] sm:$0xff] }
  0x7c   : > { %1840 = vmatprep.subr.bf16.mxu1 %v1839_v56  ;;  %v382_v17 = vld [vmem:[#allocation5 + $0x1b0] sm:$0xff]  ;;  %v389_v19 = vld [vmem:[#allocation5 + $0x1e8] sm:$0xff]  ;;  %v387_v20 = vld [vmem:[#allocation5 + $0x1d8] sm:$0xff]  ;;  %v1721_v22 = vpack.c.bf16 %v380_v14, %v376_v13 }
  0x7d   : > { %v391_v21 = vld [vmem:[#allocation5 + $0x1f8] sm:$0xff]  ;;  %v1849_v23 = vpack.c.bf16 %v382_v17, %v378_v15  ;;  %v1723_v24 = vpack.c.bf16 %v389_v19, %v385_v18  ;;  %v384_v25 = vld [vmem:[#allocation5 + $0x1c0] sm:$0xff]  ;;  %v386_v27 = vld [vmem:[#allocation5 + $0x1d0] sm:$0xff] }
  0x7e   : > { %1714 = vmatpush1.bf16.msra.mxu0 %v1713_v62  ;;  %v388_v26 = vld [vmem:[#allocation5 + $0x1e0] sm:$0xff]  ;;  %v1851_v28 = vpack.c.bf16 %v391_v21, %v387_v20  ;;  %v390_v29 = vld [vmem:[#allocation5 + $0x1f0] sm:$0xff]  ;;  %v393_v30 = vld [vmem:[#allocation5 + $0x208] sm:$0xff] }
  0x7f   : > { %1842 = vmatpush1.bf16.msra.mxu1 %v1841_v63  ;;  %1716 = vmatprep.subr.bf16.mxu0 %v1715_v0  ;;  %v397_v31 = vld [vmem:[#allocation5 + $0x228] sm:$0xff]  ;;  %v395_v32 = vld [vmem:[#allocation5 + $0x218] sm:$0xff]  ;;  %v1725_v34 = vpack.c.bf16 %v388_v26, %v384_v25  ;;  %v1853_v35 = vpack.c.bf16 %v390_v29, %v386_v27  ;;  %v392_v37 = vld [vmem:[#allocation5 + $0x200] sm:$0xff] }
  0x80   : > { %1844 = vmatprep.subr.bf16.mxu1 %v1843_v4  ;;  %v399_v33 = vld [vmem:[#allocation5 + $0x238] sm:$0xff]  ;;  %v1727_v36 = vpack.c.bf16 %v397_v31, %v393_v30  ;;  %v396_v38 = vld [vmem:[#allocation5 + $0x220] sm:$0xff]  ;;  %v394_v39 = vld [vmem:[#allocation5 + $0x210] sm:$0xff] }
  0x81   : > { %v1855_v40 = vpack.c.bf16 %v399_v33, %v395_v32  ;;  %v398_v41 = vld [vmem:[#allocation5 + $0x230] sm:$0xff]  ;;  %v401_v42 = vld [vmem:[#allocation5 + $0x248] sm:$0xff]  ;;  %v403_v44 = vld [vmem:[#allocation5 + $0x258] sm:$0xff]  ;;  %v1729_v46 = vpack.c.bf16 %v396_v38, %v392_v37 }
  0x82   : > { %1718 = vmatpush1.bf16.msra.mxu0 %v1717_v10  ;;  %v405_v43 = vld [vmem:[#allocation5 + $0x268] sm:$0xff]  ;;  %v407_v45 = vld [vmem:[#allocation5 + $0x278] sm:$0xff]  ;;  %v1857_v47 = vpack.c.bf16 %v398_v41, %v394_v39  ;;  %v400_v49 = vld [vmem:[#allocation5 + $0x240] sm:$0xff] }
  0x83   : > { %1846 = vmatpush1.bf16.msra.mxu1 %v1845_v11  ;;  %1720 = vmatprep.subr.bf16.mxu0 %v1719_v12  ;;  %v1731_v48 = vpack.c.bf16 %v405_v43, %v401_v42  ;;  %v404_v50 = vld [vmem:[#allocation5 + $0x260] sm:$0xff]  ;;  %v402_v51 = vld [vmem:[#allocation5 + $0x250] sm:$0xff]  ;;  %v1859_v52 = vpack.c.bf16 %v407_v45, %v403_v44  ;;  %v409_v54 = vld [vmem:[#allocation5 + $0x288] sm:$0xff] }
  0x84   : > { %1848 = vmatprep.subr.bf16.mxu1 %v1847_v16  ;;  %v406_v53 = vld [vmem:[#allocation5 + $0x270] sm:$0xff]  ;;  %v413_v55 = vld [vmem:[#allocation5 + $0x2a8] sm:$0xff]  ;;  %v411_v56 = vld [vmem:[#allocation5 + $0x298] sm:$0xff]  ;;  %v1733_v58 = vpack.c.bf16 %v404_v50, %v400_v49 }
  0x85   : > { %v415_v57 = vld [vmem:[#allocation5 + $0x2b8] sm:$0xff]  ;;  %v1861_v59 = vpack.c.bf16 %v406_v53, %v402_v51  ;;  %v1735_v60 = vpack.c.bf16 %v413_v55, %v409_v54  ;;  %v408_v61 = vld [vmem:[#allocation5 + $0x280] sm:$0xff]  ;;  %v410_v63 = vld [vmem:[#allocation5 + $0x290] sm:$0xff] }
  0x86   : > { %1722 = vmatpush1.bf16.msra.mxu0 %v1721_v22  ;;  %v412_v62 = vld [vmem:[#allocation5 + $0x2a0] sm:$0xff]  ;;  %v1863_v0 = vpack.c.bf16 %v415_v57, %v411_v56  ;;  %v414_v1 = vld [vmem:[#allocation5 + $0x2b0] sm:$0xff]  ;;  %v417_v2 = vld [vmem:[#allocation5 + $0x2c8] sm:$0xff] }
  0x87   : > { %1850 = vmatpush1.bf16.msra.mxu1 %v1849_v23  ;;  %1724 = vmatprep.subr.bf16.mxu0 %v1723_v24  ;;  %v421_v3 = vld [vmem:[#allocation5 + $0x2e8] sm:$0xff]  ;;  %v419_v4 = vld [vmem:[#allocation5 + $0x2d8] sm:$0xff]  ;;  %v1737_v6 = vpack.c.bf16 %v412_v62, %v408_v61  ;;  %v416_v7 = vld [vmem:[#allocation5 + $0x2c0] sm:$0xff]  ;;  %v1865_v8 = vpack.c.bf16 %v414_v1, %v410_v63 }
  0x88   : > { %1852 = vmatprep.subr.bf16.mxu1 %v1851_v28  ;;  %v423_v5 = vld [vmem:[#allocation5 + $0x2f8] sm:$0xff]  ;;  %v1739_v9 = vpack.c.bf16 %v421_v3, %v417_v2  ;;  %v420_v10 = vld [vmem:[#allocation5 + $0x2e0] sm:$0xff]  ;;  %v418_v11 = vld [vmem:[#allocation5 + $0x2d0] sm:$0xff] }
  0x89   : > { %v422_v12 = vld [vmem:[#allocation5 + $0x2f0] sm:$0xff]  ;;  %v1867_v13 = vpack.c.bf16 %v423_v5, %v419_v4  ;;  %v425_v14 = vld [vmem:[#allocation5 + $0x308] sm:$0xff]  ;;  %v427_v17 = vld [vmem:[#allocation5 + $0x318] sm:$0xff]  ;;  %v1741_v19 = vpack.c.bf16 %v420_v10, %v416_v7 }
  0x8a   : > { %1726 = vmatpush1.bf16.msra.mxu0 %v1725_v34  ;;  %v429_v15 = vld [vmem:[#allocation5 + $0x328] sm:$0xff]  ;;  %v431_v18 = vld [vmem:[#allocation5 + $0x338] sm:$0xff]  ;;  %v1869_v20 = vpack.c.bf16 %v422_v12, %v418_v11  ;;  %v424_v22 = vld [vmem:[#allocation5 + $0x300] sm:$0xff] }
  0x8b   : > { %1854 = vmatpush1.bf16.msra.mxu1 %v1853_v35  ;;  %1728 = vmatprep.subr.bf16.mxu0 %v1727_v36  ;;  %v2704_v16 = vld [vmem:[%s2693_s29 + $0x8] sm:$0xff]  ;;  %v1743_v21 = vpack.c.bf16 %v429_v15, %v425_v14  ;;  %v428_v23 = vld [vmem:[#allocation5 + $0x320] sm:$0xff]  ;;  %v426_v24 = vld [vmem:[#allocation5 + $0x310] sm:$0xff]  ;;  %v1871_v25 = vpack.c.bf16 %v431_v18, %v427_v17 }
  0x8c   : > { %1856 = vmatprep.subr.bf16.mxu1 %v1855_v40  ;;  %670 = vmatprep.mubr.f32.mxu0 %v2704_v16  ;;  %v430_v26 = vld [vmem:[#allocation5 + $0x330] sm:$0xff]  ;;  %v433_v27 = vld [vmem:[#allocation5 + $0x348] sm:$0xff]  ;;  %v435_v29 = vld [vmem:[#allocation5 + $0x358] sm:$0xff]  ;;  %v1745_v31 = vpack.c.bf16 %v428_v23, %v424_v22 }
  0x8d   : > { %812 = vmatprep.mubr.f32.mxu1 %v2704_v16  ;;  %v437_v28 = vld [vmem:[#allocation5 + $0x368] sm:$0xff]  ;;  %v439_v30 = vld [vmem:[#allocation5 + $0x378] sm:$0xff]  ;;  %v1873_v32 = vpack.c.bf16 %v430_v26, %v426_v24  ;;  %v432_v34 = vld [vmem:[#allocation5 + $0x340] sm:$0xff] }
  0x8e   : > { %1730 = vmatpush1.bf16.msra.mxu0 %v1729_v46  ;;  %v1747_v33 = vpack.c.bf16 %v437_v28, %v433_v27  ;;  %v436_v35 = vld [vmem:[#allocation5 + $0x360] sm:$0xff]  ;;  %v434_v36 = vld [vmem:[#allocation5 + $0x350] sm:$0xff]  ;;  %v1875_v37 = vpack.c.bf16 %v439_v30, %v435_v29  ;;  %v441_v39 = vld [vmem:[#allocation5 + $0x388] sm:$0xff] }
  0x8f   : > { %1858 = vmatpush1.bf16.msra.mxu1 %v1857_v47  ;;  %1732 = vmatprep.subr.bf16.mxu0 %v1731_v48  ;;  %v438_v38 = vld [vmem:[#allocation5 + $0x370] sm:$0xff]  ;;  %v445_v40 = vld [vmem:[#allocation5 + $0x3a8] sm:$0xff]  ;;  %v443_v41 = vld [vmem:[#allocation5 + $0x398] sm:$0xff]  ;;  %v1749_v43 = vpack.c.bf16 %v436_v35, %v432_v34 }
  0x90   : > { %1860 = vmatprep.subr.bf16.mxu1 %v1859_v52  ;;  %v447_v42 = vld [vmem:[#allocation5 + $0x3b8] sm:$0xff]  ;;  %v1877_v44 = vpack.c.bf16 %v438_v38, %v434_v36  ;;  %v1751_v45 = vpack.c.bf16 %v445_v40, %v441_v39  ;;  %v440_v46 = vld [vmem:[#allocation5 + $0x380] sm:$0xff]  ;;  %v442_v48 = vld [vmem:[#allocation5 + $0x390] sm:$0xff] }
  0x91   : > { %v444_v47 = vld [vmem:[#allocation5 + $0x3a0] sm:$0xff]  ;;  %v1879_v49 = vpack.c.bf16 %v447_v42, %v443_v41  ;;  %v446_v50 = vld [vmem:[#allocation5 + $0x3b0] sm:$0xff]  ;;  %v449_v51 = vld [vmem:[#allocation5 + $0x3c8] sm:$0xff] }
  0x92   : > { %1734 = vmatpush1.bf16.msra.mxu0 %v1733_v58  ;;  %v453_v52 = vld [vmem:[#allocation5 + $0x3e8] sm:$0xff]  ;;  %v451_v53 = vld [vmem:[#allocation5 + $0x3d8] sm:$0xff]  ;;  %v1753_v55 = vpack.c.bf16 %v444_v47, %v440_v46  ;;  %v1881_v56 = vpack.c.bf16 %v446_v50, %v442_v48  ;;  %v448_v58 = vld [vmem:[#allocation5 + $0x3c0] sm:$0xff] }
  0x93   : > { %1862 = vmatpush1.bf16.msra.mxu1 %v1861_v59  ;;  %1736 = vmatprep.subr.bf16.mxu0 %v1735_v60  ;;  %v455_v54 = vld [vmem:[#allocation5 + $0x3f8] sm:$0xff]  ;;  %v1755_v57 = vpack.c.bf16 %v453_v52, %v449_v51  ;;  %v452_v59 = vld [vmem:[#allocation5 + $0x3e0] sm:$0xff]  ;;  %v450_v60 = vld [vmem:[#allocation5 + $0x3d0] sm:$0xff] }
  0x94   : > { %1864 = vmatprep.subr.bf16.mxu1 %v1863_v0  ;;  %v1883_v61 = vpack.c.bf16 %v455_v54, %v451_v53  ;;  %v454_v62 = vld [vmem:[#allocation5 + $0x3f0] sm:$0xff]  ;;  %v457_v63 = vld [vmem:[#allocation5 + $0x408] sm:$0xff]  ;;  %v459_v1 = vld [vmem:[#allocation5 + $0x418] sm:$0xff]  ;;  %v1757_v3 = vpack.c.bf16 %v452_v59, %v448_v58 }
  0x95   : > { %v461_v0 = vld [vmem:[#allocation5 + $0x428] sm:$0xff]  ;;  %v463_v2 = vld [vmem:[#allocation5 + $0x438] sm:$0xff]  ;;  %v1885_v4 = vpack.c.bf16 %v454_v62, %v450_v60  ;;  %v460_v7 = vld [vmem:[#allocation5 + $0x420] sm:$0xff] }
  0x96   : > { %1738 = vmatpush1.bf16.msra.mxu0 %v1737_v6  ;;  %v1759_v5 = vpack.c.bf16 %v461_v0, %v457_v63  ;;  %v456_v6 = vld [vmem:[#allocation5 + $0x400] sm:$0xff]  ;;  %v462_v10 = vld [vmem:[#allocation5 + $0x430] sm:$0xff]  ;;  %v465_v11 = vld [vmem:[#allocation5 + $0x448] sm:$0xff] }
  0x97   : > { %1866 = vmatpush1.bf16.msra.mxu1 %v1865_v8  ;;  %1740 = vmatprep.subr.bf16.mxu0 %v1739_v9  ;;  %v458_v8 = vld [vmem:[#allocation5 + $0x410] sm:$0xff]  ;;  %v1887_v9 = vpack.c.bf16 %v463_v2, %v459_v1  ;;  %v469_v12 = vld [vmem:[#allocation5 + $0x468] sm:$0xff]  ;;  %v471_v14 = vld [vmem:[#allocation5 + $0x478] sm:$0xff]  ;;  %v1761_v17 = vpack.c.bf16 %v460_v7, %v456_v6 }
  0x98   : > { %1868 = vmatprep.subr.bf16.mxu1 %v1867_v13  ;;  %v467_v13 = vld [vmem:[#allocation5 + $0x458] sm:$0xff]  ;;  %v324_v15 = vld [vmem:[%s2693_s29] sm:$0xff]  ;;  %v1889_v18 = vpack.c.bf16 %v462_v10, %v458_v8  ;;  %v466_v22 = vld [vmem:[#allocation5 + $0x450] sm:$0xff] }
  0x99   : > { %v1891_v23 = vpack.c.bf16 %v471_v14, %v467_v13  ;;  %v470_v24 = vld [vmem:[#allocation5 + $0x470] sm:$0xff]  ;;  %v477_v26 = vld [vmem:[#allocation5 + $0x4a8] sm:$0xff]  ;;  %v475_v27 = vld [vmem:[#allocation5 + $0x498] sm:$0xff] }
  0x9a   : > { %1742 = vmatpush1.bf16.msra.mxu0 %v1741_v19  ;;  %v1763_v19 = vpack.c.bf16 %v469_v12, %v465_v11  ;;  %v479_v28 = vld [vmem:[#allocation5 + $0x4b8] sm:$0xff]  ;;  %v1893_v30 = vpack.c.bf16 %v470_v24, %v466_v22  ;;  %v474_v34 = vld [vmem:[#allocation5 + $0x490] sm:$0xff]  ;;  %v485_v38 = vld [vmem:[#allocation5 + $0x4e8] sm:$0xff] }
  0x9b   : > { %1870 = vmatpush1.bf16.msra.mxu1 %v1869_v20  ;;  %1744 = vmatprep.subr.bf16.mxu0 %v1743_v21  ;;  %v464_v20 = vld [vmem:[#allocation5 + $0x440] sm:$0xff]  ;;  %v1895_v35 = vpack.c.bf16 %v479_v28, %v475_v27  ;;  %v478_v36 = vld [vmem:[#allocation5 + $0x4b0] sm:$0xff]  ;;  %v483_v39 = vld [vmem:[#allocation5 + $0x4d8] sm:$0xff] }
  0x9c   : > { %1872 = vmatprep.subr.bf16.mxu1 %v1871_v25  ;;  %v468_v21 = vld [vmem:[#allocation5 + $0x460] sm:$0xff]  ;;  %v473_v25 = vld [vmem:[#allocation5 + $0x488] sm:$0xff]  ;;  %v487_v40 = vld [vmem:[#allocation5 + $0x4f8] sm:$0xff]  ;;  %v1897_v42 = vpack.c.bf16 %v478_v36, %v474_v34 }
  0x9d   : > { %v1765_v29 = vpack.c.bf16 %v468_v21, %v464_v20  ;;  %v482_v46 = vld [vmem:[#allocation5 + $0x4d0] sm:$0xff]  ;;  %v1899_v47 = vpack.c.bf16 %v487_v40, %v483_v39  ;;  %v493_v50 = vld [vmem:[#allocation5 + $0x528] sm:$0xff]  ;;  %v491_v51 = vld [vmem:[#allocation5 + $0x518] sm:$0xff] }
  0x9e   : > { %1746 = vmatpush1.bf16.msra.mxu0 %v1745_v31  ;;  %v1767_v31 = vpack.c.bf16 %v477_v26, %v473_v25  ;;  %v486_v48 = vld [vmem:[#allocation5 + $0x4f0] sm:$0xff]  ;;  %v495_v52 = vld [vmem:[#allocation5 + $0x538] sm:$0xff]  ;;  %v501_v62 = vld [vmem:[#allocation5 + $0x568] sm:$0xff] }
  0x9f   : > { %1874 = vmatpush1.bf16.msra.mxu1 %v1873_v32  ;;  %1748 = vmatprep.subr.bf16.mxu0 %v1747_v33  ;;  %v472_v32 = vld [vmem:[#allocation5 + $0x480] sm:$0xff]  ;;  %v1901_v54 = vpack.c.bf16 %v486_v48, %v482_v46  ;;  %v490_v58 = vld [vmem:[#allocation5 + $0x510] sm:$0xff]  ;;  %v1903_v59 = vpack.c.bf16 %v495_v52, %v491_v51  ;;  %v499_v63 = vld [vmem:[#allocation5 + $0x558] sm:$0xff] }
  0xa0   : > { %1876 = vmatprep.subr.bf16.mxu1 %v1875_v37  ;;  %v476_v33 = vld [vmem:[#allocation5 + $0x4a0] sm:$0xff]  ;;  %v481_v37 = vld [vmem:[#allocation5 + $0x4c8] sm:$0xff]  ;;  %v494_v60 = vld [vmem:[#allocation5 + $0x530] sm:$0xff] }
  0xa1   : > { %v1769_v41 = vpack.c.bf16 %v476_v33, %v472_v32  ;;  %v503_v0 = vld [vmem:[#allocation5 + $0x578] sm:$0xff]  ;;  %v1905_v2 = vpack.c.bf16 %v494_v60, %v490_v58  ;;  %v498_v6 = vld [vmem:[#allocation5 + $0x550] sm:$0xff]  ;;  %v509_v10 = vld [vmem:[#allocation5 + $0x5a8] sm:$0xff] }
  0xa2   : > { %1750 = vmatpush1.bf16.msra.mxu0 %v1749_v43  ;;  %v1771_v43 = vpack.c.bf16 %v485_v38, %v481_v37  ;;  %v1907_v7 = vpack.c.bf16 %v503_v0, %v499_v63  ;;  %v502_v8 = vld [vmem:[#allocation5 + $0x570] sm:$0xff]  ;;  %v507_v11 = vld [vmem:[#allocation5 + $0x598] sm:$0xff]  ;;  %v504_v14 = vld [vmem:[#allocation5 + $0x580] sm:$0xff] }
  0xa3   : > { %1878 = vmatpush1.bf16.msra.mxu1 %v1877_v44  ;;  %1752 = vmatprep.subr.bf16.mxu0 %v1751_v45  ;;  %v480_v44 = vld [vmem:[#allocation5 + $0x4c0] sm:$0xff]  ;;  %v511_v12 = vld [vmem:[#allocation5 + $0x5b8] sm:$0xff]  ;;  %v510_v20 = vld [vmem:[#allocation5 + $0x5b0] sm:$0xff] }
  0xa4   : > { %1880 = vmatprep.subr.bf16.mxu1 %v1879_v49  ;;  %v484_v45 = vld [vmem:[#allocation5 + $0x4e0] sm:$0xff]  ;;  %v489_v49 = vld [vmem:[#allocation5 + $0x508] sm:$0xff]  ;;  %v1911_v21 = vpack.c.bf16 %v511_v12, %v507_v11  ;;  %v2710_v24 = vld [vmem:[%s2693_s29 + $0x18] sm:$0xff] }
  0xa5   : > { %v1773_v53 = vpack.c.bf16 %v484_v45, %v480_v44  ;;  %v513_v22 = vld [vmem:[#allocation5 + $0x5c8] sm:$0xff]  ;;  %v515_v25 = vld [vmem:[#allocation5 + $0x5d8] sm:$0xff]  ;;  %v514_v32 = vld [vmem:[#allocation5 + $0x5d0] sm:$0xff] }
  0xa6   : > { %1754 = vmatpush1.bf16.msra.mxu0 %v1753_v55  ;;  %v1775_v55 = vpack.c.bf16 %v493_v50, %v489_v49  ;;  %v519_v26 = vld [vmem:[#allocation5 + $0x5f8] sm:$0xff]  ;;  %v518_v34 = vld [vmem:[#allocation5 + $0x5f0] sm:$0xff]  ;;  %v525_v36 = vld [vmem:[#allocation5 + $0x628] sm:$0xff] }
  0xa7   : > { %1882 = vmatpush1.bf16.msra.mxu1 %v1881_v56  ;;  %1756 = vmatprep.subr.bf16.mxu0 %v1755_v57  ;;  %v488_v56 = vld [vmem:[#allocation5 + $0x500] sm:$0xff]  ;;  %v1915_v33 = vpack.c.bf16 %v519_v26, %v515_v25  ;;  %v523_v37 = vld [vmem:[#allocation5 + $0x618] sm:$0xff]  ;;  %v1917_v40 = vpack.c.bf16 %v518_v34, %v514_v32  ;;  %v522_v44 = vld [vmem:[#allocation5 + $0x610] sm:$0xff] }
  0xa8   : > { %1884 = vmatprep.subr.bf16.mxu1 %v1883_v61  ;;  %v492_v57 = vld [vmem:[#allocation5 + $0x520] sm:$0xff]  ;;  %v497_v61 = vld [vmem:[#allocation5 + $0x548] sm:$0xff]  ;;  %v527_v38 = vld [vmem:[#allocation5 + $0x638] sm:$0xff] }
  0xa9   : > { %v1777_v1 = vpack.c.bf16 %v492_v57, %v488_v56  ;;  %v1919_v45 = vpack.c.bf16 %v527_v38, %v523_v37  ;;  %v526_v46 = vld [vmem:[#allocation5 + $0x630] sm:$0xff]  ;;  %v533_v48 = vld [vmem:[#allocation5 + $0x668] sm:$0xff]  ;;  %v531_v49 = vld [vmem:[#allocation5 + $0x658] sm:$0xff] }
  0xaa   : > { %1758 = vmatpush1.bf16.msra.mxu0 %v1757_v3  ;;  %v1779_v3 = vpack.c.bf16 %v501_v62, %v497_v61  ;;  %v535_v50 = vld [vmem:[#allocation5 + $0x678] sm:$0xff]  ;;  %v1921_v52 = vpack.c.bf16 %v526_v46, %v522_v44  ;;  %v530_v56 = vld [vmem:[#allocation5 + $0x650] sm:$0xff]  ;;  %v541_v60 = vld [vmem:[#allocation5 + $0x6a8] sm:$0xff] }
  0xab   : > { %1886 = vmatpush1.bf16.msra.mxu1 %v1885_v4  ;;  %1760 = vmatprep.subr.bf16.mxu0 %v1759_v5  ;;  %v496_v4 = vld [vmem:[#allocation5 + $0x540] sm:$0xff]  ;;  %v1923_v57 = vpack.c.bf16 %v535_v50, %v531_v49  ;;  %v534_v58 = vld [vmem:[#allocation5 + $0x670] sm:$0xff]  ;;  %v539_v61 = vld [vmem:[#allocation5 + $0x698] sm:$0xff] }
  0xac   : > { %1888 = vmatprep.subr.bf16.mxu1 %v1887_v9  ;;  %v500_v5 = vld [vmem:[#allocation5 + $0x560] sm:$0xff]  ;;  %v505_v9 = vld [vmem:[#allocation5 + $0x588] sm:$0xff]  ;;  %v543_v62 = vld [vmem:[#allocation5 + $0x6b8] sm:$0xff]  ;;  %v1925_v0 = vpack.c.bf16 %v534_v58, %v530_v56 }
  0xad   : > { %671 = vmatmul.mubr.f32.vlgmr.msra.gmra.mrb[0].mxu0 %v324_v15  ;;  %v1781_v13 = vpack.c.bf16 %v500_v5, %v496_v4  ;;  %v538_v4 = vld [vmem:[#allocation5 + $0x690] sm:$0xff]  ;;  %v1927_v5 = vpack.c.bf16 %v543_v62, %v539_v61  ;;  %v565_v34 = vld [vmem:[#allocation5 + $0x768] sm:$0xff] }
  0xae   : > { %1762 = vmatpush1.bf16.msra.mxu0 %v1761_v17  ;;  %813 = vmatmul.mubr.f32.vlgmr.msra.gmra.mrb[0].mxu1 %v324_v15  ;;  %v1909_v15 = vpack.c.bf16 %v502_v8, %v498_v6  ;;  %v1783_v17 = vpack.c.bf16 %v509_v10, %v505_v9  ;;  %v542_v6 = vld [vmem:[#allocation5 + $0x6b0] sm:$0xff]  ;;  %v549_v8 = vld [vmem:[#allocation5 + $0x6e8] sm:$0xff]  ;;  %v547_v9 = vld [vmem:[#allocation5 + $0x6d8] sm:$0xff] }
  0xaf   : > { %1890 = vmatpush1.bf16.msra.mxu1 %v1889_v18  ;;  %1764 = vmatprep.subr.bf16.mxu0 %v1763_v19  ;;  %v508_v18 = vld [vmem:[#allocation5 + $0x5a0] sm:$0xff]  ;;  %v506_v19 = vld [vmem:[#allocation5 + $0x590] sm:$0xff]  ;;  %v551_v10 = vld [vmem:[#allocation5 + $0x6f8] sm:$0xff]  ;;  %v1929_v12 = vpack.c.bf16 %v542_v6, %v538_v4 }
  0xb0   : > { %1892 = vmatprep.subr.bf16.mxu1 %v1891_v23  ;;  %v517_v23 = vld [vmem:[#allocation5 + $0x5e8] sm:$0xff]  ;;  %741 = vmatprep.mubr.f32.mxu0 %v2710_v24  ;;  %v1785_v27 = vpack.c.bf16 %v508_v18, %v504_v14  ;;  %v1913_v28 = vpack.c.bf16 %v510_v20, %v506_v19  ;;  %v544_v14 = vld [vmem:[#allocation5 + $0x6c0] sm:$0xff]  ;;  %v1931_v18 = vpack.c.bf16 %v551_v10, %v547_v9  ;;  %v550_v19 = vld [vmem:[#allocation5 + $0x6f0] sm:$0xff] }
  0xb1   : > { %883 = vmatprep.mubr.f32.mxu1 %v2710_v24  ;;  %v553_v20 = vld [vmem:[#allocation5 + $0x708] sm:$0xff]  ;;  %v558_v32 = vld [vmem:[#allocation5 + $0x730] sm:$0xff] }
  0xb2   : > { %1766 = vmatpush1.bf16.msra.mxu0 %v1765_v29  ;;  %v1787_v29 = vpack.c.bf16 %v517_v23, %v513_v22  ;;  %v555_v22 = vld [vmem:[#allocation5 + $0x718] sm:$0xff]  ;;  %v566_v44 = vld [vmem:[#allocation5 + $0x770] sm:$0xff]  ;;  %v573_v46 = vld [vmem:[#allocation5 + $0x7a8] sm:$0xff] }
  0xb3   : > { %1894 = vmatpush1.bf16.msra.mxu1 %v1893_v30  ;;  %1768 = vmatprep.subr.bf16.mxu0 %v1767_v31  ;;  %v512_v30 = vld [vmem:[#allocation5 + $0x5c0] sm:$0xff]  ;;  %v559_v23 = vld [vmem:[#allocation5 + $0x738] sm:$0xff]  ;;  %v574_v56 = vld [vmem:[#allocation5 + $0x7b0] sm:$0xff] }
  0xb4   : > { %1896 = vmatprep.subr.bf16.mxu1 %v1895_v35  ;;  %v516_v31 = vld [vmem:[#allocation5 + $0x5e0] sm:$0xff]  ;;  %v521_v35 = vld [vmem:[#allocation5 + $0x608] sm:$0xff]  ;;  %v582_v4 = vld [vmem:[#allocation5 + $0x7f0] sm:$0xff] }
  0xb5   : > { %v1789_v39 = vpack.c.bf16 %v516_v31, %v512_v30  ;;  %v554_v30 = vld [vmem:[#allocation5 + $0x710] sm:$0xff]  ;;  %v1935_v31 = vpack.c.bf16 %v559_v23, %v555_v22  ;;  %v581_v58 = vld [vmem:[#allocation5 + $0x7e8] sm:$0xff] }
  0xb6   : > { %1770 = vmatpush1.bf16.msra.mxu0 %v1769_v41  ;;  %v1791_v41 = vpack.c.bf16 %v525_v36, %v521_v35  ;;  %v563_v35 = vld [vmem:[#allocation5 + $0x758] sm:$0xff]  ;;  %v1937_v38 = vpack.c.bf16 %v558_v32, %v554_v30  ;;  %v919_v6 = vld [vmem:[#allocation7 + $0x28] sm:$0xff]  ;;  %v2715_v22 = vld [vmem:[%s2693_s29 + $0x10] sm:$0xff] }
  0xb7   : > { %1898 = vmatpush1.bf16.msra.mxu1 %v1897_v42  ;;  %1772 = vmatprep.subr.bf16.mxu0 %v1771_v43  ;;  %v520_v42 = vld [vmem:[#allocation5 + $0x600] sm:$0xff]  ;;  %v567_v36 = vld [vmem:[#allocation5 + $0x778] sm:$0xff]  ;;  %v931_v32 = vld [vmem:[#allocation7 + $0x88] sm:$0xff] }
  0xb8   : > { %1900 = vmatprep.subr.bf16.mxu1 %v1899_v47  ;;  %v524_v43 = vld [vmem:[#allocation5 + $0x620] sm:$0xff]  ;;  %v529_v47 = vld [vmem:[#allocation5 + $0x648] sm:$0xff] }
  0xb9   : > { %v1793_v51 = vpack.c.bf16 %v524_v43, %v520_v42  ;;  %v562_v42 = vld [vmem:[#allocation5 + $0x750] sm:$0xff]  ;;  %v1939_v43 = vpack.c.bf16 %v567_v36, %v563_v35  ;;  %v937_v35 = vld [vmem:[#allocation7 + $0xb8] sm:$0xff] }
  0xba   : > { %1774 = vmatpush1.bf16.msra.mxu0 %v1773_v53  ;;  %v1795_v53 = vpack.c.bf16 %v533_v48, %v529_v47  ;;  %v571_v47 = vld [vmem:[#allocation5 + $0x798] sm:$0xff]  ;;  %v1941_v50 = vpack.c.bf16 %v566_v44, %v562_v42  ;;  %v939_v44 = vld [vmem:[#allocation7 + $0xc8] sm:$0xff] }
  0xbb   : > { %1902 = vmatpush1.bf16.msra.mxu1 %v1901_v54  ;;  %1776 = vmatprep.subr.bf16.mxu0 %v1775_v55  ;;  %v528_v54 = vld [vmem:[#allocation5 + $0x640] sm:$0xff]  ;;  %v575_v48 = vld [vmem:[#allocation5 + $0x7b8] sm:$0xff] }
  0xbc   : > { %1904 = vmatprep.subr.bf16.mxu1 %v1903_v59  ;;  %v532_v55 = vld [vmem:[#allocation5 + $0x660] sm:$0xff]  ;;  %v537_v59 = vld [vmem:[#allocation5 + $0x688] sm:$0xff] }
  0xbd   : > { %v1797_v63 = vpack.c.bf16 %v532_v55, %v528_v54  ;;  %v570_v54 = vld [vmem:[#allocation5 + $0x790] sm:$0xff]  ;;  %v1943_v55 = vpack.c.bf16 %v575_v48, %v571_v47  ;;  %v945_v47 = vld [vmem:[#allocation7 + $0xf8] sm:$0xff] }
  0xbe   : > { %1778 = vmatpush1.bf16.msra.mxu0 %v1777_v1  ;;  %v1799_v1 = vpack.c.bf16 %v541_v60, %v537_v59  ;;  %v579_v59 = vld [vmem:[#allocation5 + $0x7d8] sm:$0xff]  ;;  %v1945_v62 = vpack.c.bf16 %v574_v56, %v570_v54  ;;  %v947_v56 = vld [vmem:[#allocation7 + $0x108] sm:$0xff] }
  0xbf   : > { %1906 = vmatpush1.bf16.msra.mxu1 %v1905_v2  ;;  %1780 = vmatprep.subr.bf16.mxu0 %v1779_v3  ;;  %v536_v2 = vld [vmem:[#allocation5 + $0x680] sm:$0xff]  ;;  %v583_v60 = vld [vmem:[#allocation5 + $0x7f8] sm:$0xff] }
  0xc0   : > { %1908 = vmatprep.subr.bf16.mxu1 %v1907_v7  ;;  %v540_v3 = vld [vmem:[#allocation5 + $0x6a0] sm:$0xff]  ;;  %v545_v7 = vld [vmem:[#allocation5 + $0x6c8] sm:$0xff] }
  0xc1   : > { %v1801_v11 = vpack.c.bf16 %v540_v3, %v536_v2  ;;  %v578_v2 = vld [vmem:[#allocation5 + $0x7d0] sm:$0xff]  ;;  %v1947_v3 = vpack.c.bf16 %v583_v60, %v579_v59  ;;  %v953_v59 = vld [vmem:[#allocation7 + $0x138] sm:$0xff] }
  0xc2   : > { %1782 = vmatpush1.bf16.msra.mxu0 %v1781_v13  ;;  %v1803_v13 = vpack.c.bf16 %v549_v8, %v545_v7  ;;  %v917_v7 = vld [vmem:[#allocation7 + $0x18] sm:$0xff]  ;;  %v1949_v10 = vpack.c.bf16 %v582_v4, %v578_v2  ;;  %v952_v2 = vld [vmem:[#allocation7 + $0x130] sm:$0xff]  ;;  %v959_v4 = vld [vmem:[#allocation7 + $0x168] sm:$0xff] }
  0xc3   : > { %1910 = vmatpush1.bf16.msra.mxu1 %v1909_v15  ;;  %1784 = vmatprep.subr.bf16.mxu0 %v1783_v17  ;;  %v548_v15 = vld [vmem:[#allocation5 + $0x6e0] sm:$0xff]  ;;  %v546_v17 = vld [vmem:[#allocation5 + $0x6d0] sm:$0xff]  ;;  %v921_v8 = vld [vmem:[#allocation7 + $0x38] sm:$0xff] }
  0xc4   : > { %1912 = vmatprep.subr.bf16.mxu1 %v1911_v21  ;;  %v557_v21 = vld [vmem:[#allocation5 + $0x728] sm:$0xff]  ;;  %v1805_v25 = vpack.c.bf16 %v548_v15, %v544_v14  ;;  %v1933_v26 = vpack.c.bf16 %v550_v19, %v546_v17  ;;  %v916_v14 = vld [vmem:[#allocation7 + $0x10] sm:$0xff]  ;;  %v2079_v15 = vpack.c.bf16 %v921_v8, %v917_v7 }
  0xc5   : > { %v920_v17 = vld [vmem:[#allocation7 + $0x30] sm:$0xff]  ;;  %v927_v19 = vld [vmem:[#allocation7 + $0x68] sm:$0xff] }
  0xc6   : > { %1786 = vmatpush1.bf16.msra.mxu0 %v1785_v27  ;;  %v1807_v27 = vpack.c.bf16 %v557_v21, %v553_v20  ;;  %v925_v20 = vld [vmem:[#allocation7 + $0x58] sm:$0xff] }
  0xc7   : > { %1914 = vmatpush1.bf16.msra.mxu1 %v1913_v28  ;;  %1788 = vmatprep.subr.bf16.mxu0 %v1787_v29  ;;  %v552_v28 = vld [vmem:[#allocation5 + $0x700] sm:$0xff]  ;;  %v929_v21 = vld [vmem:[#allocation7 + $0x78] sm:$0xff] }
  0xc8   : > { %1916 = vmatprep.subr.bf16.mxu1 %v1915_v33  ;;  %v556_v29 = vld [vmem:[#allocation5 + $0x720] sm:$0xff]  ;;  %v561_v33 = vld [vmem:[#allocation5 + $0x748] sm:$0xff]  ;;  %v2083_v30 = vpack.c.bf16 %v929_v21, %v925_v20 }
  0xc9   : > { %v1809_v37 = vpack.c.bf16 %v556_v29, %v552_v28  ;;  %v926_v28 = vld [vmem:[#allocation7 + $0x60] sm:$0xff]  ;;  %v924_v29 = vld [vmem:[#allocation7 + $0x50] sm:$0xff] }
  0xca   : > { %1790 = vmatpush1.bf16.msra.mxu0 %v1789_v39  ;;  %v1811_v39 = vpack.c.bf16 %v565_v34, %v561_v33  ;;  %v935_v33 = vld [vmem:[#allocation7 + $0xa8] sm:$0xff]  ;;  %v933_v34 = vld [vmem:[#allocation7 + $0x98] sm:$0xff] }
  0xcb   : > { %1918 = vmatpush1.bf16.msra.mxu1 %v1917_v40  ;;  %1792 = vmatprep.subr.bf16.mxu0 %v1791_v41  ;;  %v560_v40 = vld [vmem:[#allocation5 + $0x740] sm:$0xff]  ;;  %v2087_v42 = vpack.c.bf16 %v937_v35, %v933_v34 }
  0xcc   : > { %1920 = vmatprep.subr.bf16.mxu1 %v1919_v45  ;;  %v564_v41 = vld [vmem:[#allocation5 + $0x760] sm:$0xff]  ;;  %v569_v45 = vld [vmem:[#allocation5 + $0x788] sm:$0xff] }
  0xcd   : > { %v1813_v49 = vpack.c.bf16 %v564_v41, %v560_v40  ;;  %v934_v40 = vld [vmem:[#allocation7 + $0xa0] sm:$0xff]  ;;  %v932_v41 = vld [vmem:[#allocation7 + $0x90] sm:$0xff] }
  0xce   : > { %1794 = vmatpush1.bf16.msra.mxu0 %v1793_v51  ;;  %v1815_v51 = vpack.c.bf16 %v573_v46, %v569_v45  ;;  %v943_v45 = vld [vmem:[#allocation7 + $0xe8] sm:$0xff]  ;;  %v941_v46 = vld [vmem:[#allocation7 + $0xd8] sm:$0xff] }
  0xcf   : > { %1922 = vmatpush1.bf16.msra.mxu1 %v1921_v52  ;;  %1796 = vmatprep.subr.bf16.mxu0 %v1795_v53  ;;  %v568_v52 = vld [vmem:[#allocation5 + $0x780] sm:$0xff]  ;;  %v2091_v54 = vpack.c.bf16 %v945_v47, %v941_v46 }
  0xd0   : > { %1924 = vmatprep.subr.bf16.mxu1 %v1923_v57  ;;  %v572_v53 = vld [vmem:[#allocation5 + $0x7a0] sm:$0xff]  ;;  %v577_v57 = vld [vmem:[#allocation5 + $0x7c8] sm:$0xff] }
  0xd1   : > { %v1817_v61 = vpack.c.bf16 %v572_v53, %v568_v52  ;;  %v942_v52 = vld [vmem:[#allocation7 + $0xe0] sm:$0xff]  ;;  %v940_v53 = vld [vmem:[#allocation7 + $0xd0] sm:$0xff] }
  0xd2   : > { %1798 = vmatpush1.bf16.msra.mxu0 %v1797_v63  ;;  %v1819_v63 = vpack.c.bf16 %v581_v58, %v577_v57  ;;  %v951_v57 = vld [vmem:[#allocation7 + $0x128] sm:$0xff]  ;;  %v949_v58 = vld [vmem:[#allocation7 + $0x118] sm:$0xff] }
  0xd3   : > { %1926 = vmatpush1.bf16.msra.mxu1 %v1925_v0  ;;  %1800 = vmatprep.subr.bf16.mxu0 %v1799_v1  ;;  %v576_v0 = vld [vmem:[#allocation5 + $0x7c0] sm:$0xff] }
  0xd4   : > { %1928 = vmatprep.subr.bf16.mxu1 %v1927_v5  ;;  %v580_v1 = vld [vmem:[#allocation5 + $0x7e0] sm:$0xff]  ;;  %v915_v5 = vld [vmem:[#allocation7 + $0x8] sm:$0xff] }
  0xd5   : > { %v1821_v9 = vpack.c.bf16 %v580_v1, %v576_v0  ;;  %v948_v0 = vld [vmem:[#allocation7 + $0x110] sm:$0xff]  ;;  %v2095_v1 = vpack.c.bf16 %v953_v59, %v949_v58 }
  0xd6   : > { %1802 = vmatpush1.bf16.msra.mxu0 %v1801_v11  ;;  %v1951_v11 = vpack.c.bf16 %v919_v6, %v915_v5  ;;  %v957_v5 = vld [vmem:[#allocation7 + $0x158] sm:$0xff]  ;;  %v2097_v8 = vpack.c.bf16 %v952_v2, %v948_v0  ;;  %v992_v0 = vld [vmem:[#allocation7 + $0x270] sm:$0xff]  ;;  %v999_v2 = vld [vmem:[#allocation7 + $0x2a8] sm:$0xff] }
  0xd7   : > { %1930 = vmatpush1.bf16.msra.mxu1 %v1929_v12  ;;  %1804 = vmatprep.subr.bf16.mxu0 %v1803_v13  ;;  %v914_v12 = vld [vmem:[#allocation7] sm:$0xff]  ;;  %v961_v6 = vld [vmem:[#allocation7 + $0x178] sm:$0xff] }
  0xd8   : > { %1932 = vmatprep.subr.bf16.mxu1 %v1931_v18  ;;  %v918_v13 = vld [vmem:[#allocation7 + $0x20] sm:$0xff]  ;;  %v923_v18 = vld [vmem:[#allocation7 + $0x48] sm:$0xff] }
  0xd9   : > { %v1953_v23 = vpack.c.bf16 %v918_v13, %v914_v12  ;;  %v956_v12 = vld [vmem:[#allocation7 + $0x150] sm:$0xff]  ;;  %v2099_v13 = vpack.c.bf16 %v961_v6, %v957_v5 }
  0xda   : > { %1806 = vmatpush1.bf16.msra.mxu0 %v1805_v25  ;;  %v2081_v25 = vpack.c.bf16 %v920_v17, %v916_v14  ;;  %v960_v14 = vld [vmem:[#allocation7 + $0x170] sm:$0xff]  ;;  %v967_v17 = vld [vmem:[#allocation7 + $0x1a8] sm:$0xff] }
  0xdb   : > { %1934 = vmatpush1.bf16.msra.mxu1 %v1933_v26  ;;  %1808 = vmatprep.subr.bf16.mxu0 %v1807_v27  ;;  %v1955_v26 = vpack.c.bf16 %v927_v19, %v923_v18  ;;  %v922_v27 = vld [vmem:[#allocation7 + $0x40] sm:$0xff]  ;;  %v965_v18 = vld [vmem:[#allocation7 + $0x198] sm:$0xff]  ;;  %v2101_v21 = vpack.c.bf16 %v960_v14, %v956_v12  ;;  %v1000_v12 = vld [vmem:[#allocation7 + $0x2b0] sm:$0xff] }
  0xdc   : > { %1936 = vmatprep.subr.bf16.mxu1 %v1935_v31  ;;  %v928_v31 = vld [vmem:[#allocation7 + $0x70] sm:$0xff]  ;;  %v1957_v36 = vpack.c.bf16 %v926_v28, %v922_v27  ;;  %v969_v19 = vld [vmem:[#allocation7 + $0x1b8] sm:$0xff]  ;;  %v1007_v14 = vld [vmem:[#allocation7 + $0x2e8] sm:$0xff] }
  0xdd   : > { %v964_v27 = vld [vmem:[#allocation7 + $0x190] sm:$0xff]  ;;  %v2103_v28 = vpack.c.bf16 %v969_v19, %v965_v18 }
  0xde   : > { %1810 = vmatpush1.bf16.msra.mxu0 %v1809_v37  ;;  %v2085_v37 = vpack.c.bf16 %v928_v31, %v924_v29  ;;  %v968_v29 = vld [vmem:[#allocation7 + $0x1b0] sm:$0xff]  ;;  %v975_v31 = vld [vmem:[#allocation7 + $0x1e8] sm:$0xff] }
  0xdf   : > { %1938 = vmatpush1.bf16.msra.mxu1 %v1937_v38  ;;  %1812 = vmatprep.subr.bf16.mxu0 %v1811_v39  ;;  %v1959_v38 = vpack.c.bf16 %v935_v33, %v931_v32  ;;  %v930_v39 = vld [vmem:[#allocation7 + $0x80] sm:$0xff]  ;;  %v973_v32 = vld [vmem:[#allocation7 + $0x1d8] sm:$0xff]  ;;  %v2105_v35 = vpack.c.bf16 %v968_v29, %v964_v27  ;;  %v1008_v27 = vld [vmem:[#allocation7 + $0x2f0] sm:$0xff] }
  0xe0   : > { %1940 = vmatprep.subr.bf16.mxu1 %v1939_v43  ;;  %v936_v43 = vld [vmem:[#allocation7 + $0xb0] sm:$0xff]  ;;  %v1961_v48 = vpack.c.bf16 %v934_v40, %v930_v39  ;;  %v977_v33 = vld [vmem:[#allocation7 + $0x1f8] sm:$0xff]  ;;  %v1015_v29 = vld [vmem:[#allocation7 + $0x328] sm:$0xff] }
  0xe1   : > { %v972_v39 = vld [vmem:[#allocation7 + $0x1d0] sm:$0xff]  ;;  %v2107_v40 = vpack.c.bf16 %v977_v33, %v973_v32 }
  0xe2   : > { %1814 = vmatpush1.bf16.msra.mxu0 %v1813_v49  ;;  %v2089_v49 = vpack.c.bf16 %v936_v43, %v932_v41  ;;  %v976_v41 = vld [vmem:[#allocation7 + $0x1f0] sm:$0xff]  ;;  %v983_v43 = vld [vmem:[#allocation7 + $0x228] sm:$0xff] }
  0xe3   : > { %1942 = vmatpush1.bf16.msra.mxu1 %v1941_v50  ;;  %1816 = vmatprep.subr.bf16.mxu0 %v1815_v51  ;;  %v1963_v50 = vpack.c.bf16 %v943_v45, %v939_v44  ;;  %v938_v51 = vld [vmem:[#allocation7 + $0xc0] sm:$0xff]  ;;  %v981_v44 = vld [vmem:[#allocation7 + $0x218] sm:$0xff]  ;;  %v2109_v47 = vpack.c.bf16 %v976_v41, %v972_v39  ;;  %v1016_v39 = vld [vmem:[#allocation7 + $0x330] sm:$0xff] }
  0xe4   : > { %1944 = vmatprep.subr.bf16.mxu1 %v1943_v55  ;;  %v944_v55 = vld [vmem:[#allocation7 + $0xf0] sm:$0xff]  ;;  %v1965_v60 = vpack.c.bf16 %v942_v52, %v938_v51  ;;  %v985_v45 = vld [vmem:[#allocation7 + $0x238] sm:$0xff]  ;;  %v1023_v41 = vld [vmem:[#allocation7 + $0x368] sm:$0xff] }
  0xe5   : > { %v980_v51 = vld [vmem:[#allocation7 + $0x210] sm:$0xff]  ;;  %v2111_v52 = vpack.c.bf16 %v985_v45, %v981_v44 }
  0xe6   : > { %1818 = vmatpush1.bf16.msra.mxu0 %v1817_v61  ;;  %v1967_v61 = vpack.c.bf16 %v951_v57, %v947_v56  ;;  %v989_v56 = vld [vmem:[#allocation7 + $0x258] sm:$0xff] }
  0xe7   : > { %1946 = vmatpush1.bf16.msra.mxu1 %v1945_v62  ;;  %1820 = vmatprep.subr.bf16.mxu0 %v1819_v63  ;;  %v946_v62 = vld [vmem:[#allocation7 + $0x100] sm:$0xff]  ;;  %v993_v57 = vld [vmem:[#allocation7 + $0x278] sm:$0xff] }
  0xe8   : > { %1948 = vmatprep.subr.bf16.mxu1 %v1947_v3  ;;  %v950_v63 = vld [vmem:[#allocation7 + $0x120] sm:$0xff]  ;;  %v955_v3 = vld [vmem:[#allocation7 + $0x148] sm:$0xff] }
  0xe9   : > { %v1969_v7 = vpack.c.bf16 %v950_v63, %v946_v62  ;;  %v988_v62 = vld [vmem:[#allocation7 + $0x250] sm:$0xff]  ;;  %v2115_v63 = vpack.c.bf16 %v993_v57, %v989_v56 }
  0xea   : > { %1822 = vmatpush1.bf16.msra.mxu0 %v1821_v9  ;;  %v1971_v9 = vpack.c.bf16 %v959_v4, %v955_v3  ;;  %v997_v3 = vld [vmem:[#allocation7 + $0x298] sm:$0xff]  ;;  %v2117_v6 = vpack.c.bf16 %v992_v0, %v988_v62  ;;  %v1032_v62 = vld [vmem:[#allocation7 + $0x3b0] sm:$0xff]  ;;  %v1039_v0 = vld [vmem:[#allocation7 + $0x3e8] sm:$0xff] }
  0xeb   : > { %1950 = vmatpush1.bf16.msra.mxu1 %v1949_v10  ;;  %1952 = vmatprep.subr.bf16.mxu0 %v1951_v11  ;;  %v954_v10 = vld [vmem:[#allocation7 + $0x140] sm:$0xff]  ;;  %v1001_v4 = vld [vmem:[#allocation7 + $0x2b8] sm:$0xff] }
  0xec   : > { %2080 = vmatprep.subr.bf16.mxu1 %v2079_v15  ;;  %v958_v11 = vld [vmem:[#allocation7 + $0x160] sm:$0xff]  ;;  %v963_v15 = vld [vmem:[#allocation7 + $0x188] sm:$0xff] }
  0xed   : > { %742 = vmatmul.mubr.f32.vlgmr.msra.gmra.mrb[0].mxu0 %v2715_v22  ;;  %v1973_v20 = vpack.c.bf16 %v958_v11, %v954_v10  ;;  %v996_v10 = vld [vmem:[#allocation7 + $0x290] sm:$0xff]  ;;  %v2119_v11 = vpack.c.bf16 %v1001_v4, %v997_v3 }
  0xee   : > { %884 = vmatmul.mubr.f32.vlgmr.msra.gmra.mrb[0].mxu1 %v2715_v22  ;;  %1954 = vmatpush1.bf16.msra.mxu0 %v1953_v23  ;;  %v1975_v23 = vpack.c.bf16 %v967_v17, %v963_v15  ;;  %v1005_v15 = vld [vmem:[#allocation7 + $0x2d8] sm:$0xff]  ;;  %v2121_v19 = vpack.c.bf16 %v1000_v12, %v996_v10  ;;  %v1040_v10 = vld [vmem:[#allocation7 + $0x3f0] sm:$0xff]  ;;  %v1047_v12 = vld [vmem:[#allocation7 + $0x428] sm:$0xff] }
  0xef   : > { %2082 = vmatpush1.bf16.msra.mxu1 %v2081_v25  ;;  %1956 = vmatprep.subr.bf16.mxu0 %v1955_v26  ;;  %v962_v25 = vld [vmem:[#allocation7 + $0x180] sm:$0xff]  ;;  %v1009_v17 = vld [vmem:[#allocation7 + $0x2f8] sm:$0xff] }
  0xf0   : > { %2084 = vmatprep.subr.bf16.mxu1 %v2083_v30  ;;  %1256 = vmatprep.mubr.f32.mxu0 %v2704_v16  ;;  %v966_v26 = vld [vmem:[#allocation7 + $0x1a0] sm:$0xff]  ;;  %v971_v30 = vld [vmem:[#allocation7 + $0x1c8] sm:$0xff] }
  0xf1   : > { %1398 = vmatprep.mubr.f32.mxu1 %v2704_v16  ;;  %v2093_v16 = vpack.c.bf16 %v944_v55, %v940_v53  ;;  %v1977_v34 = vpack.c.bf16 %v966_v26, %v962_v25  ;;  %v984_v53 = vld [vmem:[#allocation7 + $0x230] sm:$0xff]  ;;  %v991_v55 = vld [vmem:[#allocation7 + $0x268] sm:$0xff]  ;;  %v2123_v26 = vpack.c.bf16 %v1009_v17, %v1005_v15 }
  0xf2   : > { %1958 = vmatpush1.bf16.msra.mxu0 %v1957_v36  ;;  %v1979_v36 = vpack.c.bf16 %v975_v31, %v971_v30  ;;  %v2113_v59 = vpack.c.bf16 %v984_v53, %v980_v51  ;;  %v1004_v25 = vld [vmem:[#allocation7 + $0x2d0] sm:$0xff]  ;;  %v1013_v30 = vld [vmem:[#allocation7 + $0x318] sm:$0xff]  ;;  %v1031_v53 = vld [vmem:[#allocation7 + $0x3a8] sm:$0xff] }
  0xf3   : > { %2086 = vmatpush1.bf16.msra.mxu1 %v2085_v37  ;;  %1960 = vmatprep.subr.bf16.mxu0 %v1959_v38  ;;  %v970_v37 = vld [vmem:[#allocation7 + $0x1c0] sm:$0xff]  ;;  %v1017_v31 = vld [vmem:[#allocation7 + $0x338] sm:$0xff]  ;;  %v2125_v33 = vpack.c.bf16 %v1008_v27, %v1004_v25  ;;  %v1024_v51 = vld [vmem:[#allocation7 + $0x370] sm:$0xff] }
  0xf4   : > { %2088 = vmatprep.subr.bf16.mxu1 %v2087_v42  ;;  %v974_v38 = vld [vmem:[#allocation7 + $0x1e0] sm:$0xff]  ;;  %v979_v42 = vld [vmem:[#allocation7 + $0x208] sm:$0xff]  ;;  %v1048_v25 = vld [vmem:[#allocation7 + $0x430] sm:$0xff] }
  0xf5   : > { %v1981_v46 = vpack.c.bf16 %v974_v38, %v970_v37  ;;  %v1012_v37 = vld [vmem:[#allocation7 + $0x310] sm:$0xff]  ;;  %v2127_v38 = vpack.c.bf16 %v1017_v31, %v1013_v30  ;;  %v1055_v27 = vld [vmem:[#allocation7 + $0x468] sm:$0xff] }
  0xf6   : > { %1962 = vmatpush1.bf16.msra.mxu0 %v1961_v48  ;;  %v1983_v48 = vpack.c.bf16 %v983_v43, %v979_v42  ;;  %v1021_v42 = vld [vmem:[#allocation7 + $0x358] sm:$0xff]  ;;  %v2129_v45 = vpack.c.bf16 %v1016_v39, %v1012_v37  ;;  %v1056_v37 = vld [vmem:[#allocation7 + $0x470] sm:$0xff]  ;;  %v1063_v39 = vld [vmem:[#allocation7 + $0x4a8] sm:$0xff] }
  0xf7   : > { %2090 = vmatpush1.bf16.msra.mxu1 %v2089_v49  ;;  %1964 = vmatprep.subr.bf16.mxu0 %v1963_v50  ;;  %v978_v49 = vld [vmem:[#allocation7 + $0x200] sm:$0xff]  ;;  %v1025_v43 = vld [vmem:[#allocation7 + $0x378] sm:$0xff] }
  0xf8   : > { %2092 = vmatprep.subr.bf16.mxu1 %v2091_v54  ;;  %v982_v50 = vld [vmem:[#allocation7 + $0x220] sm:$0xff]  ;;  %v987_v54 = vld [vmem:[#allocation7 + $0x248] sm:$0xff] }
  0xf9   : > { %v1985_v58 = vpack.c.bf16 %v982_v50, %v978_v49  ;;  %v1020_v49 = vld [vmem:[#allocation7 + $0x350] sm:$0xff]  ;;  %v2131_v50 = vpack.c.bf16 %v1025_v43, %v1021_v42  ;;  %v1065_v42 = vld [vmem:[#allocation7 + $0x4b8] sm:$0xff] }
  0xfa   : > { %1966 = vmatpush1.bf16.msra.mxu0 %v1965_v60  ;;  %v1987_v60 = vpack.c.bf16 %v991_v55, %v987_v54  ;;  %v1029_v54 = vld [vmem:[#allocation7 + $0x398] sm:$0xff]  ;;  %v2133_v57 = vpack.c.bf16 %v1024_v51, %v1020_v49  ;;  %v1067_v51 = vld [vmem:[#allocation7 + $0x4c8] sm:$0xff] }
  0xfb   : > { %2094 = vmatpush1.bf16.msra.mxu1 %v2093_v16  ;;  %1968 = vmatprep.subr.bf16.mxu0 %v1967_v61  ;;  %v986_v16 = vld [vmem:[#allocation7 + $0x240] sm:$0xff]  ;;  %v1033_v55 = vld [vmem:[#allocation7 + $0x3b8] sm:$0xff] }
  0xfc   : > { %2096 = vmatprep.subr.bf16.mxu1 %v2095_v1  ;;  %v990_v61 = vld [vmem:[#allocation7 + $0x260] sm:$0xff]  ;;  %v995_v1 = vld [vmem:[#allocation7 + $0x288] sm:$0xff] }
  0xfd   : > { %v1989_v5 = vpack.c.bf16 %v990_v61, %v986_v16  ;;  %v1028_v16 = vld [vmem:[#allocation7 + $0x390] sm:$0xff]  ;;  %v2135_v61 = vpack.c.bf16 %v1033_v55, %v1029_v54  ;;  %v1073_v54 = vld [vmem:[#allocation7 + $0x4f8] sm:$0xff] }
  0xfe   : > { %1970 = vmatpush1.bf16.msra.mxu0 %v1969_v7  ;;  %v1991_v7 = vpack.c.bf16 %v999_v2, %v995_v1  ;;  %v1037_v1 = vld [vmem:[#allocation7 + $0x3d8] sm:$0xff]  ;;  %v2137_v4 = vpack.c.bf16 %v1032_v62, %v1028_v16  ;;  %v1075_v62 = vld [vmem:[#allocation7 + $0x508] sm:$0xff] }
  0xff   : > { %2098 = vmatpush1.bf16.msra.mxu1 %v2097_v8  ;;  %1972 = vmatprep.subr.bf16.mxu0 %v1971_v9  ;;  %v994_v8 = vld [vmem:[#allocation7 + $0x280] sm:$0xff]  ;;  %v1041_v2 = vld [vmem:[#allocation7 + $0x3f8] sm:$0xff] }
 0x100   : > { %2100 = vmatprep.subr.bf16.mxu1 %v2099_v13  ;;  %v998_v9 = vld [vmem:[#allocation7 + $0x2a0] sm:$0xff]  ;;  %v1003_v13 = vld [vmem:[#allocation7 + $0x2c8] sm:$0xff] }
 0x101   : > { %v1993_v18 = vpack.c.bf16 %v998_v9, %v994_v8  ;;  %v1036_v8 = vld [vmem:[#allocation7 + $0x3d0] sm:$0xff]  ;;  %v2139_v9 = vpack.c.bf16 %v1041_v2, %v1037_v1  ;;  %v1081_v1 = vld [vmem:[#allocation7 + $0x538] sm:$0xff] }
 0x102   : > { %1974 = vmatpush1.bf16.msra.mxu0 %v1973_v20  ;;  %v1995_v20 = vpack.c.bf16 %v1007_v14, %v1003_v13  ;;  %v1045_v13 = vld [vmem:[#allocation7 + $0x418] sm:$0xff]  ;;  %v2141_v17 = vpack.c.bf16 %v1040_v10, %v1036_v8  ;;  %v1080_v8 = vld [vmem:[#allocation7 + $0x530] sm:$0xff]  ;;  %v1087_v10 = vld [vmem:[#allocation7 + $0x568] sm:$0xff] }
 0x103   : > { %2102 = vmatpush1.bf16.msra.mxu1 %v2101_v21  ;;  %1976 = vmatprep.subr.bf16.mxu0 %v1975_v23  ;;  %v1002_v21 = vld [vmem:[#allocation7 + $0x2c0] sm:$0xff]  ;;  %v1049_v14 = vld [vmem:[#allocation7 + $0x438] sm:$0xff] }
 0x104   : > { %2104 = vmatprep.subr.bf16.mxu1 %v2103_v28  ;;  %v1006_v23 = vld [vmem:[#allocation7 + $0x2e0] sm:$0xff]  ;;  %v1011_v28 = vld [vmem:[#allocation7 + $0x308] sm:$0xff] }
 0x105   : > { %v1997_v32 = vpack.c.bf16 %v1006_v23, %v1002_v21  ;;  %v1044_v21 = vld [vmem:[#allocation7 + $0x410] sm:$0xff]  ;;  %v2143_v23 = vpack.c.bf16 %v1049_v14, %v1045_v13 }
 0x106   : > { %1978 = vmatpush1.bf16.msra.mxu0 %v1977_v34  ;;  %v1999_v34 = vpack.c.bf16 %v1015_v29, %v1011_v28  ;;  %v1053_v28 = vld [vmem:[#allocation7 + $0x458] sm:$0xff]  ;;  %v2145_v31 = vpack.c.bf16 %v1048_v25, %v1044_v21  ;;  %v1088_v21 = vld [vmem:[#allocation7 + $0x570] sm:$0xff]  ;;  %v1095_v25 = vld [vmem:[#allocation7 + $0x5a8] sm:$0xff] }
 0x107   : > { %2106 = vmatpush1.bf16.msra.mxu1 %v2105_v35  ;;  %1980 = vmatprep.subr.bf16.mxu0 %v1979_v36  ;;  %v1010_v35 = vld [vmem:[#allocation7 + $0x300] sm:$0xff]  ;;  %v1057_v29 = vld [vmem:[#allocation7 + $0x478] sm:$0xff] }
 0x108   : > { %2108 = vmatprep.subr.bf16.mxu1 %v2107_v40  ;;  %v1014_v36 = vld [vmem:[#allocation7 + $0x320] sm:$0xff]  ;;  %v1019_v40 = vld [vmem:[#allocation7 + $0x348] sm:$0xff] }
 0x109   : > { %v2001_v44 = vpack.c.bf16 %v1014_v36, %v1010_v35  ;;  %v1052_v35 = vld [vmem:[#allocation7 + $0x450] sm:$0xff]  ;;  %v2147_v36 = vpack.c.bf16 %v1057_v29, %v1053_v28 }
 0x10a   : > { %1982 = vmatpush1.bf16.msra.mxu0 %v1981_v46  ;;  %v2003_v46 = vpack.c.bf16 %v1023_v41, %v1019_v40  ;;  %v2722_v40 = vld [vmem:[%s2693_s29] sm:$0xff]  ;;  %v1061_v41 = vld [vmem:[#allocation7 + $0x498] sm:$0xff] }
 0x10b   : > { %2110 = vmatpush1.bf16.msra.mxu1 %v2109_v47  ;;  %1984 = vmatprep.subr.bf16.mxu0 %v1983_v48  ;;  %v1018_v47 = vld [vmem:[#allocation7 + $0x340] sm:$0xff]  ;;  %v2151_v49 = vpack.c.bf16 %v1065_v42, %v1061_v41 }
 0x10c   : > { %2112 = vmatprep.subr.bf16.mxu1 %v2111_v52  ;;  %v1022_v48 = vld [vmem:[#allocation7 + $0x360] sm:$0xff]  ;;  %v1027_v52 = vld [vmem:[#allocation7 + $0x388] sm:$0xff] }
 0x10d   : > { %v2005_v56 = vpack.c.bf16 %v1022_v48, %v1018_v47  ;;  %v1062_v47 = vld [vmem:[#allocation7 + $0x4a0] sm:$0xff]  ;;  %v1060_v48 = vld [vmem:[#allocation7 + $0x490] sm:$0xff] }
 0x10e   : > { %1986 = vmatpush1.bf16.msra.mxu0 %v1985_v58  ;;  %v2007_v58 = vpack.c.bf16 %v1031_v53, %v1027_v52  ;;  %v1071_v52 = vld [vmem:[#allocation7 + $0x4e8] sm:$0xff]  ;;  %v1069_v53 = vld [vmem:[#allocation7 + $0x4d8] sm:$0xff] }
 0x10f   : > { %2114 = vmatpush1.bf16.msra.mxu1 %v2113_v59  ;;  %1988 = vmatprep.subr.bf16.mxu0 %v1987_v60  ;;  %v1026_v59 = vld [vmem:[#allocation7 + $0x380] sm:$0xff]  ;;  %v2155_v16 = vpack.c.bf16 %v1073_v54, %v1069_v53 }
 0x110   : > { %2116 = vmatprep.subr.bf16.mxu1 %v2115_v63  ;;  %v1030_v60 = vld [vmem:[#allocation7 + $0x3a0] sm:$0xff]  ;;  %v1035_v63 = vld [vmem:[#allocation7 + $0x3c8] sm:$0xff] }
 0x111   : > { %v2009_v3 = vpack.c.bf16 %v1030_v60, %v1026_v59  ;;  %v1070_v59 = vld [vmem:[#allocation7 + $0x4e0] sm:$0xff]  ;;  %v1068_v60 = vld [vmem:[#allocation7 + $0x4d0] sm:$0xff] }
 0x112   : > { %1990 = vmatpush1.bf16.msra.mxu0 %v1989_v5  ;;  %v2011_v5 = vpack.c.bf16 %v1039_v0, %v1035_v63  ;;  %v1079_v63 = vld [vmem:[#allocation7 + $0x528] sm:$0xff]  ;;  %v1077_v0 = vld [vmem:[#allocation7 + $0x518] sm:$0xff] }
 0x113   : > { %2118 = vmatpush1.bf16.msra.mxu1 %v2117_v6  ;;  %1992 = vmatprep.subr.bf16.mxu0 %v1991_v7  ;;  %v1034_v6 = vld [vmem:[#allocation7 + $0x3c0] sm:$0xff] }
 0x114   : > { %2120 = vmatprep.subr.bf16.mxu1 %v2119_v11  ;;  %v1038_v7 = vld [vmem:[#allocation7 + $0x3e0] sm:$0xff]  ;;  %v1043_v11 = vld [vmem:[#allocation7 + $0x408] sm:$0xff] }
 0x115   : > { %v2013_v15 = vpack.c.bf16 %v1038_v7, %v1034_v6  ;;  %v1076_v6 = vld [vmem:[#allocation7 + $0x510] sm:$0xff]  ;;  %v2159_v7 = vpack.c.bf16 %v1081_v1, %v1077_v0 }
 0x116   : > { %1994 = vmatpush1.bf16.msra.mxu0 %v1993_v18  ;;  %v2015_v18 = vpack.c.bf16 %v1047_v12, %v1043_v11  ;;  %v1085_v11 = vld [vmem:[#allocation7 + $0x558] sm:$0xff]  ;;  %v2161_v14 = vpack.c.bf16 %v1080_v8, %v1076_v6  ;;  %v1120_v6 = vld [vmem:[#allocation7 + $0x670] sm:$0xff]  ;;  %v1127_v8 = vld [vmem:[#allocation7 + $0x6a8] sm:$0xff] }
 0x117   : > { %2122 = vmatpush1.bf16.msra.mxu1 %v2121_v19  ;;  %1996 = vmatprep.subr.bf16.mxu0 %v1995_v20  ;;  %v1042_v19 = vld [vmem:[#allocation7 + $0x400] sm:$0xff]  ;;  %v1089_v12 = vld [vmem:[#allocation7 + $0x578] sm:$0xff] }
 0x118   : > { %2124 = vmatprep.subr.bf16.mxu1 %v2123_v26  ;;  %v1046_v20 = vld [vmem:[#allocation7 + $0x420] sm:$0xff]  ;;  %v1051_v26 = vld [vmem:[#allocation7 + $0x448] sm:$0xff] }
 0x119   : > { %v2017_v30 = vpack.c.bf16 %v1046_v20, %v1042_v19  ;;  %v1084_v19 = vld [vmem:[#allocation7 + $0x550] sm:$0xff]  ;;  %v2163_v20 = vpack.c.bf16 %v1089_v12, %v1085_v11 }
 0x11a   : > { %1998 = vmatpush1.bf16.msra.mxu0 %v1997_v32  ;;  %v2019_v32 = vpack.c.bf16 %v1055_v27, %v1051_v26  ;;  %v1093_v26 = vld [vmem:[#allocation7 + $0x598] sm:$0xff]  ;;  %v2165_v29 = vpack.c.bf16 %v1088_v21, %v1084_v19  ;;  %v1128_v19 = vld [vmem:[#allocation7 + $0x6b0] sm:$0xff]  ;;  %v1135_v21 = vld [vmem:[#allocation7 + $0x6e8] sm:$0xff] }
 0x11b   : > { %2126 = vmatpush1.bf16.msra.mxu1 %v2125_v33  ;;  %2000 = vmatprep.subr.bf16.mxu0 %v1999_v34  ;;  %v1050_v33 = vld [vmem:[#allocation7 + $0x440] sm:$0xff]  ;;  %v1097_v27 = vld [vmem:[#allocation7 + $0x5b8] sm:$0xff] }
 0x11c   : > { %2128 = vmatprep.subr.bf16.mxu1 %v2127_v38  ;;  %v1054_v34 = vld [vmem:[#allocation7 + $0x460] sm:$0xff]  ;;  %v1059_v38 = vld [vmem:[#allocation7 + $0x488] sm:$0xff] }
 0x11d   : > { %v2021_v43 = vpack.c.bf16 %v1054_v34, %v1050_v33  ;;  %v1092_v33 = vld [vmem:[#allocation7 + $0x590] sm:$0xff]  ;;  %v2167_v34 = vpack.c.bf16 %v1097_v27, %v1093_v26 }
 0x11e   : > { %2002 = vmatpush1.bf16.msra.mxu0 %v2001_v44  ;;  %v2149_v44 = vpack.c.bf16 %v1056_v37, %v1052_v35  ;;  %v1096_v35 = vld [vmem:[#allocation7 + $0x5b0] sm:$0xff]  ;;  %v1103_v37 = vld [vmem:[#allocation7 + $0x5e8] sm:$0xff] }
 0x11f   : > { %2130 = vmatpush1.bf16.msra.mxu1 %v2129_v45  ;;  %2004 = vmatprep.subr.bf16.mxu0 %v2003_v46  ;;  %v2023_v45 = vpack.c.bf16 %v1063_v39, %v1059_v38  ;;  %v1058_v46 = vld [vmem:[#allocation7 + $0x480] sm:$0xff]  ;;  %v1101_v38 = vld [vmem:[#allocation7 + $0x5d8] sm:$0xff]  ;;  %v2169_v42 = vpack.c.bf16 %v1096_v35, %v1092_v33  ;;  %v1136_v33 = vld [vmem:[#allocation7 + $0x6f0] sm:$0xff] }
 0x120   : > { %2132 = vmatprep.subr.bf16.mxu1 %v2131_v50  ;;  %v1064_v50 = vld [vmem:[#allocation7 + $0x4b0] sm:$0xff]  ;;  %v2025_v55 = vpack.c.bf16 %v1062_v47, %v1058_v46  ;;  %v1105_v39 = vld [vmem:[#allocation7 + $0x5f8] sm:$0xff]  ;;  %v1143_v35 = vld [vmem:[#allocation7 + $0x728] sm:$0xff] }
 0x121   : > { %v1100_v46 = vld [vmem:[#allocation7 + $0x5d0] sm:$0xff]  ;;  %v2171_v47 = vpack.c.bf16 %v1105_v39, %v1101_v38 }
 0x122   : > { %2006 = vmatpush1.bf16.msra.mxu0 %v2005_v56  ;;  %v2153_v56 = vpack.c.bf16 %v1064_v50, %v1060_v48  ;;  %v1104_v48 = vld [vmem:[#allocation7 + $0x5f0] sm:$0xff]  ;;  %v1111_v50 = vld [vmem:[#allocation7 + $0x628] sm:$0xff] }
 0x123   : > { %2134 = vmatpush1.bf16.msra.mxu1 %v2133_v57  ;;  %2008 = vmatprep.subr.bf16.mxu0 %v2007_v58  ;;  %v2027_v57 = vpack.c.bf16 %v1071_v52, %v1067_v51  ;;  %v1066_v58 = vld [vmem:[#allocation7 + $0x4c0] sm:$0xff]  ;;  %v1109_v51 = vld [vmem:[#allocation7 + $0x618] sm:$0xff]  ;;  %v2173_v54 = vpack.c.bf16 %v1104_v48, %v1100_v46  ;;  %v1144_v46 = vld [vmem:[#allocation7 + $0x730] sm:$0xff] }
 0x124   : > { %2136 = vmatprep.subr.bf16.mxu1 %v2135_v61  ;;  %v1072_v61 = vld [vmem:[#allocation7 + $0x4f0] sm:$0xff]  ;;  %v2029_v2 = vpack.c.bf16 %v1070_v59, %v1066_v58  ;;  %v1113_v52 = vld [vmem:[#allocation7 + $0x638] sm:$0xff]  ;;  %v1151_v48 = vld [vmem:[#allocation7 + $0x768] sm:$0xff] }
 0x125   : > { %v1108_v58 = vld [vmem:[#allocation7 + $0x610] sm:$0xff]  ;;  %v2175_v59 = vpack.c.bf16 %v1113_v52, %v1109_v51 }
 0x126   : > { %2010 = vmatpush1.bf16.msra.mxu0 %v2009_v3  ;;  %v2031_v3 = vpack.c.bf16 %v1079_v63, %v1075_v62  ;;  %v1117_v62 = vld [vmem:[#allocation7 + $0x658] sm:$0xff] }
 0x127   : > { %2138 = vmatpush1.bf16.msra.mxu1 %v2137_v4  ;;  %2012 = vmatprep.subr.bf16.mxu0 %v2011_v5  ;;  %v1074_v4 = vld [vmem:[#allocation7 + $0x500] sm:$0xff]  ;;  %v1121_v63 = vld [vmem:[#allocation7 + $0x678] sm:$0xff] }
 0x128   : > { %2140 = vmatprep.subr.bf16.mxu1 %v2139_v9  ;;  %v1078_v5 = vld [vmem:[#allocation7 + $0x520] sm:$0xff]  ;;  %v1083_v9 = vld [vmem:[#allocation7 + $0x548] sm:$0xff] }
 0x129   : > { %v2033_v13 = vpack.c.bf16 %v1078_v5, %v1074_v4  ;;  %v1116_v4 = vld [vmem:[#allocation7 + $0x650] sm:$0xff]  ;;  %v2179_v5 = vpack.c.bf16 %v1121_v63, %v1117_v62 }
 0x12a   : > { %2014 = vmatpush1.bf16.msra.mxu0 %v2013_v15  ;;  %v2035_v15 = vpack.c.bf16 %v1087_v10, %v1083_v9  ;;  %v1125_v9 = vld [vmem:[#allocation7 + $0x698] sm:$0xff]  ;;  %v2181_v12 = vpack.c.bf16 %v1120_v6, %v1116_v4  ;;  %v1160_v4 = vld [vmem:[#allocation7 + $0x7b0] sm:$0xff]  ;;  %v1167_v6 = vld [vmem:[#allocation7 + $0x7e8] sm:$0xff] }
 0x12b   : > { %2142 = vmatpush1.bf16.msra.mxu1 %v2141_v17  ;;  %2016 = vmatprep.subr.bf16.mxu0 %v2015_v18  ;;  %v1082_v17 = vld [vmem:[#allocation7 + $0x540] sm:$0xff]  ;;  %v1129_v10 = vld [vmem:[#allocation7 + $0x6b8] sm:$0xff] }
 0x12c   : > { %2144 = vmatprep.subr.bf16.mxu1 %v2143_v23  ;;  %v1086_v18 = vld [vmem:[#allocation7 + $0x560] sm:$0xff]  ;;  %v1091_v23 = vld [vmem:[#allocation7 + $0x588] sm:$0xff] }
 0x12d   : > { %1257 = vmatmul.mubr.f32.vlgmr.msra.gmra.mrb[2].mxu0 %v2722_v40  ;;  %v2037_v28 = vpack.c.bf16 %v1086_v18, %v1082_v17  ;;  %v1124_v17 = vld [vmem:[#allocation7 + $0x690] sm:$0xff]  ;;  %v2183_v18 = vpack.c.bf16 %v1129_v10, %v1125_v9 }
 0x12e   : > { %2018 = vmatpush1.bf16.msra.mxu0 %v2017_v30  ;;  %1399 = vmatmul.mubr.f32.vlgmr.msra.gmra.mrb[2].mxu1 %v2722_v40  ;;  %v2039_v30 = vpack.c.bf16 %v1095_v25, %v1091_v23  ;;  %v1133_v23 = vld [vmem:[#allocation7 + $0x6d8] sm:$0xff]  ;;  %v2185_v27 = vpack.c.bf16 %v1128_v19, %v1124_v17  ;;  %v1168_v17 = vld [vmem:[#allocation7 + $0x7f0] sm:$0xff] }
 0x12f   : > { %2146 = vmatpush1.bf16.msra.mxu1 %v2145_v31  ;;  %2020 = vmatprep.subr.bf16.mxu0 %v2019_v32  ;;  %v1090_v31 = vld [vmem:[#allocation7 + $0x580] sm:$0xff]  ;;  %v1137_v25 = vld [vmem:[#allocation7 + $0x6f8] sm:$0xff] }
 0x130   : > { %2148 = vmatprep.subr.bf16.mxu1 %v2147_v36  ;;  %1327 = vmatprep.mubr.f32.mxu0 %v2710_v24  ;;  %v1094_v32 = vld [vmem:[#allocation7 + $0x5a0] sm:$0xff]  ;;  %v1099_v36 = vld [vmem:[#allocation7 + $0x5c8] sm:$0xff] }
 0x131   : > { %1469 = vmatprep.mubr.f32.mxu1 %v2710_v24  ;;  %v2157_v24 = vpack.c.bf16 %v1072_v61, %v1068_v60  ;;  %v2041_v41 = vpack.c.bf16 %v1094_v32, %v1090_v31  ;;  %v1112_v60 = vld [vmem:[#allocation7 + $0x630] sm:$0xff]  ;;  %v1119_v61 = vld [vmem:[#allocation7 + $0x668] sm:$0xff]  ;;  %v2187_v32 = vpack.c.bf16 %v1137_v25, %v1133_v23 }
 0x132   : > { %2022 = vmatpush1.bf16.msra.mxu0 %v2021_v43  ;;  %v2043_v43 = vpack.c.bf16 %v1103_v37, %v1099_v36  ;;  %v2177_v1 = vpack.c.bf16 %v1112_v60, %v1108_v58  ;;  %v1132_v31 = vld [vmem:[#allocation7 + $0x6d0] sm:$0xff]  ;;  %v1141_v36 = vld [vmem:[#allocation7 + $0x718] sm:$0xff]  ;;  %v1159_v60 = vld [vmem:[#allocation7 + $0x7a8] sm:$0xff] }
 0x133   : > { %2150 = vmatpush1.bf16.msra.mxu1 %v2149_v44  ;;  %2024 = vmatprep.subr.bf16.mxu0 %v2023_v45  ;;  %v1098_v44 = vld [vmem:[#allocation7 + $0x5c0] sm:$0xff]  ;;  %v1145_v37 = vld [vmem:[#allocation7 + $0x738] sm:$0xff]  ;;  %v2189_v39 = vpack.c.bf16 %v1136_v33, %v1132_v31  ;;  %v1152_v58 = vld [vmem:[#allocation7 + $0x770] sm:$0xff] }
 0x134   : > { %2152 = vmatprep.subr.bf16.mxu1 %v2151_v49  ;;  %v1102_v45 = vld [vmem:[#allocation7 + $0x5e0] sm:$0xff]  ;;  %v1107_v49 = vld [vmem:[#allocation7 + $0x608] sm:$0xff] }
 0x135   : > { %v2045_v53 = vpack.c.bf16 %v1102_v45, %v1098_v44  ;;  %v1140_v44 = vld [vmem:[#allocation7 + $0x710] sm:$0xff]  ;;  %v2191_v45 = vpack.c.bf16 %v1145_v37, %v1141_v36 }
 0x136   : > { %2026 = vmatpush1.bf16.msra.mxu0 %v2025_v55  ;;  %v2047_v55 = vpack.c.bf16 %v1111_v50, %v1107_v49  ;;  %v1149_v49 = vld [vmem:[#allocation7 + $0x758] sm:$0xff]  ;;  %v2193_v52 = vpack.c.bf16 %v1144_v46, %v1140_v44 }
 0x137   : > { %2154 = vmatpush1.bf16.msra.mxu1 %v2153_v56  ;;  %2028 = vmatprep.subr.bf16.mxu0 %v2027_v57  ;;  %v1106_v56 = vld [vmem:[#allocation7 + $0x600] sm:$0xff]  ;;  %v1153_v50 = vld [vmem:[#allocation7 + $0x778] sm:$0xff] }
 0x138   : > { %2156 = vmatprep.subr.bf16.mxu1 %v2155_v16  ;;  %v1110_v57 = vld [vmem:[#allocation7 + $0x620] sm:$0xff]  ;;  %v1115_v16 = vld [vmem:[#allocation7 + $0x648] sm:$0xff] }
 0x139   : > { %v2049_v0 = vpack.c.bf16 %v1110_v57, %v1106_v56  ;;  %v1148_v56 = vld [vmem:[#allocation7 + $0x750] sm:$0xff]  ;;  %v2195_v57 = vpack.c.bf16 %v1153_v50, %v1149_v49 }
 0x13a   : > { %2030 = vmatpush1.bf16.msra.mxu0 %v2029_v2  ;;  %v2051_v2 = vpack.c.bf16 %v1119_v61, %v1115_v16  ;;  %v1157_v16 = vld [vmem:[#allocation7 + $0x798] sm:$0xff]  ;;  %v2197_v63 = vpack.c.bf16 %v1152_v58, %v1148_v56 }
 0x13b   : > { %2158 = vmatpush1.bf16.msra.mxu1 %v2157_v24  ;;  %2032 = vmatprep.subr.bf16.mxu0 %v2031_v3  ;;  %v1114_v24 = vld [vmem:[#allocation7 + $0x640] sm:$0xff]  ;;  %v1161_v61 = vld [vmem:[#allocation7 + $0x7b8] sm:$0xff] }
 0x13c   : > { %2160 = vmatprep.subr.bf16.mxu1 %v2159_v7  ;;  %v1118_v3 = vld [vmem:[#allocation7 + $0x660] sm:$0xff]  ;;  %v1123_v7 = vld [vmem:[#allocation7 + $0x688] sm:$0xff] }
 0x13d   : > { %v2053_v11 = vpack.c.bf16 %v1118_v3, %v1114_v24  ;;  %v1156_v24 = vld [vmem:[#allocation7 + $0x790] sm:$0xff]  ;;  %v2199_v3 = vpack.c.bf16 %v1161_v61, %v1157_v16 }
 0x13e   : > { %2034 = vmatpush1.bf16.msra.mxu0 %v2033_v13  ;;  %v2055_v13 = vpack.c.bf16 %v1127_v8, %v1123_v7  ;;  %v1165_v7 = vld [vmem:[#allocation7 + $0x7d8] sm:$0xff]  ;;  %v2201_v10 = vpack.c.bf16 %v1160_v4, %v1156_v24 }
 0x13f   : > { %2162 = vmatpush1.bf16.msra.mxu1 %v2161_v14  ;;  %2036 = vmatprep.subr.bf16.mxu0 %v2035_v15  ;;  %v1122_v14 = vld [vmem:[#allocation7 + $0x680] sm:$0xff]  ;;  %v1169_v8 = vld [vmem:[#allocation7 + $0x7f8] sm:$0xff] }
 0x140   : > { %2164 = vmatprep.subr.bf16.mxu1 %v2163_v20  ;;  %v1126_v15 = vld [vmem:[#allocation7 + $0x6a0] sm:$0xff]  ;;  %v1131_v20 = vld [vmem:[#allocation7 + $0x6c8] sm:$0xff] }
 0x141   : > { %v2057_v26 = vpack.c.bf16 %v1126_v15, %v1122_v14  ;;  %v2203_v14 = vpack.c.bf16 %v1169_v8, %v1165_v7  ;;  %v1164_v15 = vld [vmem:[#allocation7 + $0x7d0] sm:$0xff] }
 0x142   : > { %2038 = vmatpush1.bf16.msra.mxu0 %v2037_v28  ;;  %v2059_v28 = vpack.c.bf16 %v1135_v21, %v1131_v20  ;;  %v2205_v19 = vpack.c.bf16 %v1168_v17, %v1164_v15 }
 0x143   : > { %2166 = vmatpush1.bf16.msra.mxu1 %v2165_v29  ;;  %2040 = vmatprep.subr.bf16.mxu0 %v2039_v30  ;;  %v1130_v29 = vld [vmem:[#allocation7 + $0x6c0] sm:$0xff] }
 0x144   : > { %2168 = vmatprep.subr.bf16.mxu1 %v2167_v34  ;;  %v1134_v30 = vld [vmem:[#allocation7 + $0x6e0] sm:$0xff]  ;;  %v1139_v34 = vld [vmem:[#allocation7 + $0x708] sm:$0xff] }
 0x145   : > { %v2061_v38 = vpack.c.bf16 %v1134_v30, %v1130_v29  ;;  %v584_v29 = vld [vmem:[%s2822_s2] sm:$0xf] }
 0x146   : > { %2042 = vmatpush1.bf16.msra.mxu0 %v2041_v41  ;;  %v2063_v41 = vpack.c.bf16 %v1143_v35, %v1139_v34 }
 0x147   : > { %2170 = vmatpush1.bf16.msra.mxu1 %v2169_v42  ;;  %2044 = vmatprep.subr.bf16.mxu0 %v2043_v43  ;;  %v1138_v42 = vld [vmem:[#allocation7 + $0x700] sm:$0xff] }
 0x148   : > { %2172 = vmatprep.subr.bf16.mxu1 %v2171_v47  ;;  %v1142_v43 = vld [vmem:[#allocation7 + $0x720] sm:$0xff]  ;;  %v1147_v47 = vld [vmem:[#allocation7 + $0x748] sm:$0xff] }
 0x149   : > { %v2065_v51 = vpack.c.bf16 %v1142_v43, %v1138_v42 }
 0x14a   : > { %2046 = vmatpush1.bf16.msra.mxu0 %v2045_v53  ;;  %v2067_v53 = vpack.c.bf16 %v1151_v48, %v1147_v47 }
 0x14b   : > { %2174 = vmatpush1.bf16.msra.mxu1 %v2173_v54  ;;  %2048 = vmatprep.subr.bf16.mxu0 %v2047_v55  ;;  %v1146_v54 = vld [vmem:[#allocation7 + $0x740] sm:$0xff] }
 0x14c   : > { %2176 = vmatprep.subr.bf16.mxu1 %v2175_v59  ;;  %v1150_v55 = vld [vmem:[#allocation7 + $0x760] sm:$0xff]  ;;  %v1155_v59 = vld [vmem:[#allocation7 + $0x788] sm:$0xff] }
 0x14d   : > { %v2069_v62 = vpack.c.bf16 %v1150_v55, %v1146_v54 }
 0x14e   : > { %2050 = vmatpush1.bf16.msra.mxu0 %v2049_v0  ;;  %v2071_v0 = vpack.c.bf16 %v1159_v60, %v1155_v59 }
 0x14f   : > { %2178 = vmatpush1.bf16.msra.mxu1 %v2177_v1  ;;  %2052 = vmatprep.subr.bf16.mxu0 %v2051_v2  ;;  %v1154_v1 = vld [vmem:[#allocation7 + $0x780] sm:$0xff] }
 0x150   : > { %2180 = vmatprep.subr.bf16.mxu1 %v2179_v5  ;;  %v1158_v2 = vld [vmem:[#allocation7 + $0x7a0] sm:$0xff]  ;;  %v1163_v5 = vld [vmem:[#allocation7 + $0x7c8] sm:$0xff] }
 0x151   : > { %v2073_v9 = vpack.c.bf16 %v1158_v2, %v1154_v1 }
 0x152   : > { %2054 = vmatpush1.bf16.msra.mxu0 %v2053_v11  ;;  %v2075_v11 = vpack.c.bf16 %v1167_v6, %v1163_v5 }
 0x153   : > { %2182 = vmatpush1.bf16.msra.mxu1 %v2181_v12  ;;  %2056 = vmatprep.subr.bf16.mxu0 %v2055_v13  ;;  %v1162_v12 = vld [vmem:[#allocation7 + $0x7c0] sm:$0xff] }
 0x154   : > { %2184 = vmatprep.subr.bf16.mxu1 %v2183_v18  ;;  %v1166_v13 = vld [vmem:[#allocation7 + $0x7e0] sm:$0xff] }
 0x155   : > { %v2077_v18 = vpack.c.bf16 %v1166_v13, %v1162_v12 }
 0x156   : > { %2058 = vmatpush1.bf16.msra.mxu0 %v2057_v26  ;;  %v586_v26 = vlaneseq }
 0x157   : > { %2186 = vmatpush1.bf16.msra.mxu1 %v2185_v27  ;;  %2060 = vmatprep.subr.bf16.mxu0 %v2059_v28 }
 0x158   : > { %2188 = vmatprep.subr.bf16.mxu1 %v2187_v32  ;;  %v587_v27 = vshrl.u32 %v586_v26, 7 }
 0x15a   : > { %2062 = vmatpush1.bf16.msra.mxu0 %v2061_v38  ;;  %v2730_v28 = vsub.s32 0, %v587_v27  ;;  %v2735_v30 = vsub.s32 2, %v587_v27  ;;  %v2737_v31 = vsub.s32 1, %v587_v27  ;;  %v2739_v32 = vsub.s32 3, %v587_v27 }
 0x15b   : > { %2190 = vmatpush1.bf16.msra.mxu1 %v2189_v39  ;;  %2064 = vmatprep.subr.bf16.mxu0 %v2063_v41 }
 0x15c   : > { %2192 = vmatprep.subr.bf16.mxu1 %v2191_v45  ;;  %v597_v33 = vrot.slane %v584_v29, %v2735_v30  ;;  %v593_v34 = vrot.slane %v584_v29, %v2737_v31  ;;  %v601_v35 = vrot.slane %v584_v29, %v2739_v32 }
 0x15e   : > { %2066 = vmatpush1.bf16.msra.mxu0 %v2065_v51 }
 0x15f   : > { %2194 = vmatpush1.bf16.msra.mxu1 %v2193_v52  ;;  %2068 = vmatprep.subr.bf16.mxu0 %v2067_v53  ;;  %v1170_v53 = vld [vmem:[%s2824_s4] sm:$0xf] }
 0x160   : > { %2196 = vmatprep.subr.bf16.mxu1 %v2195_v57  ;;  %v1175_v54 = vrot.slane %v1170_v53, %v2730_v28  ;;  %v1183_v55 = vrot.slane %v1170_v53, %v2735_v30  ;;  %v1179_v56 = vrot.slane %v1170_v53, %v2737_v31  ;;  %v1187_v57 = vrot.slane %v1170_v53, %v2739_v32 }
 0x162   : > { %2070 = vmatpush1.bf16.msra.mxu0 %v2069_v62 }
 0x163   : > { %2198 = vmatpush1.bf16.msra.mxu1 %v2197_v63  ;;  %2072 = vmatprep.subr.bf16.mxu0 %v2071_v0 }
 0x164   : > { %2200 = vmatprep.subr.bf16.mxu1 %v2199_v3 }
 0x166   : > { %2074 = vmatpush1.bf16.msra.mxu0 %v2073_v9  ;;  %v2311_v9 = vld [vmem:[%s2693_s29 + $0x8] sm:$0xff] }
 0x167   : > { %2202 = vmatpush1.bf16.msra.mxu1 %v2201_v10  ;;  %2076 = vmatprep.subr.bf16.mxu0 %v2075_v11  ;;  %v2312_v11 = vld [vmem:[%s2693_s29 + $0x10] sm:$0xff] }
 0x168   : > { %2204 = vmatprep.subr.bf16.mxu1 %v2203_v14  ;;  %v2313_v14 = vld [vmem:[%s2693_s29 + $0x18] sm:$0xff] }
 0x16a   : > { %2078 = vmatpush1.bf16.msra.mxu0 %v2077_v18 }
 0x16b   : > { %2206 = vmatpush1.bf16.msra.mxu1 %v2205_v19 }
 0x16d   : > { %1328 = vmatmul.mubr.f32.vlgmr.msra.gmra.mrb[2].mxu0 %v2715_v22 }
 0x16e   : > { %1470 = vmatmul.mubr.f32.vlgmr.msra.gmra.mrb[2].mxu1 %v2715_v22  ;;  %v589_v22 = vrot.slane %v584_v29, %v2730_v28 }
 0x1c0   : > { %v743_v20 = vpop.f32.mrb[0].mxu0 }
 0x1c1   : > { %v885_v21 = vpop.f32.mrb[0].mxu1  ;;  %v745_v23 = vpop.f32.mrb[1].mxu0  ;;  %v2207_v36 = vadd.f32 %v743_v20, %v589_v22 }
 0x1c2   : > { %v887_v25 = vpop.f32.mrb[1].mxu1  ;;  %v2209_v37 = vadd.f32 %v885_v21, %v597_v33  ;;  %v2208_v38 = vadd.f32 %v745_v23, %v593_v34 }
 0x1c3   : > { %v2210_v39 = vadd.f32 %v887_v25, %v601_v35  ;;  %v1684_v41 = vmul.f32 -1.442695, %v2207_v36 }
 0x1c4   : > { %v1686_v42 = vmul.f32 -1.442695, %v2209_v37  ;;  %v1685_v43 = vmul.f32 -1.442695, %v2208_v38 }
 0x1c5   : > { %v1687_v44 = vmul.f32 -1.442695, %v2210_v39  ;;  %2292 = vpow2.f32 %v1684_v41  ;;  %v1511_v39 = vld [vmem:[%s2825_s5] sm:$0xf] }
 0x1c6   : > { %2294 = vpow2.f32 %v1686_v42  ;;  %v1537_v41 = vld [vmem:[%s2826_s6] sm:$0xf]  ;;  %v1516_v42 = vrot.slane %v1511_v39, %v2730_v28 }
 0x1c7   : > { %2296 = vpow2.f32 %v1685_v43  ;;  %v1524_v43 = vrot.slane %v1511_v39, %v2735_v30 }
 0x1c8   : > { %2298 = vpow2.f32 %v1687_v44  ;;  %v1520_v44 = vrot.slane %v1511_v39, %v2737_v31 }
 0x1cf   : > { %v2293_v45 = vpop.eup %2292 }
 0x1d0   : > { %v2295_v46 = vpop.eup %2294  ;;  %v902_v49 = vadd.f32 1.0, %v2293_v45  ;;  %v1528_v45 = vrot.slane %v1511_v39, %v2739_v32 }
 0x1d1   : > { %v2297_v47 = vpop.eup %2296  ;;  %v904_v50 = vadd.f32 1.0, %v2295_v46 }
 0x1d2   : > { %v2299_v48 = vpop.eup %2298  ;;  %v903_v51 = vadd.f32 1.0, %v2297_v47  ;;  %2300 = vrcp.f32 %v902_v49  ;;  %v1542_v47 = vrot.slane %v1537_v41, %v2730_v28  ;;  %v1546_v49 = vrot.slane %v1537_v41, %v2737_v31 }
 0x1d3   : > { %v905_v52 = vadd.f32 1.0, %v2299_v48  ;;  %2302 = vrcp.f32 %v904_v50  ;;  %v1550_v48 = vrot.slane %v1537_v41, %v2735_v30  ;;  %v1554_v50 = vrot.slane %v1537_v41, %v2739_v32 }
 0x1d4   : > { %2304 = vrcp.f32 %v903_v51 }
 0x1d5   : > { %2306 = vrcp.f32 %v905_v52 }
 0x1dc   : > { %v2301_v59 = vpop.eup %2300 }
 0x1dd   : > { %v2303_v62 = vpop.eup %2302 }
 0x1de   : > { %v2305_v2 = vpop.eup %2304 }
 0x1df   : > { %v2307_v4 = vpop.eup %2306 }
 0x240   : > { %v1329_v58 = vpop.f32.mrb[2].mxu0 }
 0x241   : > { %v2211_v60 = vadd.f32 %v1329_v58, %v1175_v54  ;;  %v1471_v16 = vpop.f32.mrb[2].mxu1  ;;  %v1331_v61 = vpop.f32.mrb[3].mxu0 }
 0x242   : > { %v2213_v63 = vadd.f32 %v1471_v16, %v1183_v55  ;;  %v2212_v0 = vadd.f32 %v1331_v61, %v1179_v56  ;;  %v1473_v1 = vpop.f32.mrb[3].mxu1 }
 0x243   : > { %v1476_v24 = vmul.f32 %v2301_v59, %v2211_v60  ;;  %v2214_v3 = vadd.f32 %v1473_v1, %v1187_v57 }
 0x244   : > { %v1478_v5 = vmul.f32 %v2303_v62, %v2213_v63  ;;  %v1477_v6 = vmul.f32 %v2305_v2, %v2212_v0 }
 0x245   : > { %v1480_v7 = vadd.f32 %v2722_v40, %v1476_v24  ;;  %v1479_v8 = vmul.f32 %v2307_v4, %v2214_v3 }
 0x246   : > { %v1481_v10 = vadd.f32 %v2311_v9, %v1477_v6  ;;  %v1482_v12 = vadd.f32 %v2312_v11, %v1478_v5 }
 0x247   : > { %v1483_v15 = vadd.f32 %v2313_v14, %v1479_v8 }
 0x248   : > { %v1484_v13 = vadd.f32 %v1481_v10, %v1480_v7 }
 0x24a   : > { %v1485_v17 = vadd.f32 %v1484_v13, %v1482_v12 }
 0x24c   : > { %v1486_v18 = vadd.f32 %v1485_v17, %v1483_v15 }
 0x24e   : > { %1487 = vadd.xlane.f32.xlu0 %v1486_v18 }
 0x2db   : > { %v1488_v19 = vpop.xlane.xlu0 %1487 }
 0x2dc   : > { %v1490_v20 = vmul.f32 0.001953125, %v1488_v19 }
 0x2de   : > { %v1491_v21 = vsub.f32 %v1480_v7, %v1490_v20  ;;  %v1492_v23 = vsub.f32 %v1481_v10, %v1490_v20  ;;  %v1493_v25 = vsub.f32 %v1482_v12, %v1490_v20  ;;  %v1494_v26 = vsub.f32 %v1483_v15, %v1490_v20 }
 0x2e0   : > { %v1495_v27 = vmul.f32 %v1491_v21, %v1491_v21  ;;  %v1496_v29 = vmul.f32 %v1492_v23, %v1492_v23  ;;  %v1497_v40 = vmul.f32 %v1493_v25, %v1493_v25  ;;  %v1498_v33 = vmul.f32 %v1494_v26, %v1494_v26 }
 0x2e2   : > { %v1499_v22 = vadd.f32 %v1496_v29, %v1495_v27 }
 0x2e4   : > { %v1500_v34 = vadd.f32 %v1499_v22, %v1497_v40 }
 0x2e6   : > { %v1501_v35 = vadd.f32 %v1500_v34, %v1498_v33 }
 0x2e8   : > { %1502 = vadd.xlane.f32.xlu0 %v1501_v35 }
 0x375   : > { %v1503_v36 = vpop.xlane.xlu0 %1502 }
 0x376   : > { %v1504_v37 = vmul.f32 0.001953125, %v1503_v36 }
 0x378   : > { %v1505_v38 = vadd.f32 1e-05, %v1504_v37 }
 0x37a   : > { %2308 = vrsqrt.f32 %v1505_v38 }
 0x384   : > { %v2309_v46 = vpop.eup %2308 }
 0x385   : > { %v1507_v51 = vmul.f32 %v2309_v46, %v1491_v21  ;;  %v1508_v52 = vmul.f32 %v2309_v46, %v1492_v23  ;;  %v1509_v53 = vmul.f32 %v2309_v46, %v1493_v25  ;;  %v1510_v54 = vmul.f32 %v2309_v46, %v1494_v26 }
 0x387   : > { %v1533_v55 = vmul.f32 %v1516_v42, %v1507_v51  ;;  %v1534_v56 = vmul.f32 %v1520_v44, %v1508_v52  ;;  %v1535_v57 = vmul.f32 %v1524_v43, %v1509_v53  ;;  %v1536_v28 = vmul.f32 %v1528_v45, %v1510_v54 }
 0x389   : > { %v1559_v58 = vadd.f32 %v1542_v47, %v1533_v55  ;;  %v1560_v30 = vadd.f32 %v1546_v49, %v1534_v56  ;;  %v1561_v59 = vadd.f32 %v1550_v48, %v1535_v57  ;;  %v1562_v31 = vadd.f32 %v1554_v50, %v1536_v28 }
 0x38b   : > { %1563 = vst [vmem:[%s323_s19] sm:$0xff] %v1559_v58  ;;  %1564 = vst [vmem:[%s323_s19 + $0x8] sm:$0xff] %v1560_v30 }
 0x38c   : > { %1565 = vst [vmem:[%s323_s19 + $0x10] sm:$0xff] %v1561_v59  ;;  %1566 = vst [vmem:[%s323_s19 + $0x18] sm:$0xff] %v1562_v31 }
 0x38d   : > { %2413 = shalt.err (!%p2410_p2)
}
 0x38e   : > { %s2414_s12 = scalar_lea.hbm %s2776_s9, 512  ;;  %s2418_s21 = scalar_lea.hbm %s2827_s7, 1024 }
 0x38f   : > { %p2415_p13 = scmp.ne.s32.totalorder %s2776_s9, %s2414_s12  ;;  %p2419_p4 = scmp.lt.u32.totalorder %s2776_s9, %s2827_s7 }
 0x390   : > { %p2420_p5 = scmp.lt.u32.totalorder %s2418_s21, %s2414_s12  ;;  %p2422_p11 = scmp.lt.u32.totalorder %s2414_s12, %s2776_s9 }
 0x391   : > { %p2416_p6 = pnand %p2415_p13, %p2841_p0 }
 0x392   : > { %p2421_p8 = por %p2420_p5, %p2419_p4 }
 0x393   : > { %p2417_p10 = pneg %p2416_p6 }
 0x394   : > { %p2423_p1 = por %p2422_p11, %p2421_p8 }
 0x396   : > { %p2424_p3 = pnand %p2423_p1, %p2417_p10 }
 0x398   : > { %2427 = shalt.err (!%p2424_p3)
}
 0x399   : > { %2233 = dma.vmem_to_hbm [thread:$0]  (%p2841_p0), %s2778_s23, 512, %s2776_s9, %s1568_s28  }
 0x39a PF: > { %s1594_s29 = sand.u32 1, %s2458_s24   ;;  %p2842_p7 = scmp.ne.s32.totalorder %s2832_s8, 0 }
 0x39b   : > { %p2843_p9 = scmp.ge.s32.totalorder %s2470_s27, 2  ;;  %s1595_s30 = scalar_lea.sflag [#allocation4], %s1594_s29 }
 0x39d   : > { %p2247_p12 = pnand %p2843_p9, %p2842_p7 }
 0x39f   : > { %2453 = dma.done.wait (!%p2247_p12), %s1595_s30, 512  }
 0x3a0   : > { %2455 = vsyncadd (!%p2247_p12), %s1595_s30, 4294966784  ;;  %p21_p2 = scmp.ge.s32.totalorder %s2628_s13, 4   ;;  %s2844_s24 = smov %s2462_s25 }
 0x3a1   : > { %s2845_s25 = smov %s2466_s26  ;;  %s2846_s26 = smov %s2644_s17 }
 0x3a2   : > { %s2847_s27 = smov %s2628_s13  ;;  %23 = sbr.rel (!%p21_p2) target bundleno = 6 (0x6), region = 101 }
 0x3a9   :  { %1600 = vsyncpa [#allocation3], 1 }
 0x3aa   :  { %1602 = vsyncpa [#allocation3 + $0x1], 1 }
 0x3ab   :  { %1603 = vsyncpa [#allocation6], 1 }
 0x3ac   :  { %1604 = vsyncpa [#allocation4], 1 }
 0x3ad   :  { %1606 = vsyncpa [#allocation4 + $0x1], 1 }

</bundles_post_ra>
